<compile_context>
chip_gen: v7x
topology: tpu7x:2x2x1
jax: 0.10.0
libtpu: 0.0.40
codegen_flags: <defaults>
</compile_context>

<pallas_src>
import functools

import numpy as np
import jax
import jax.numpy as jnp
from jax import lax
from jax.experimental import pallas as pl
from jax.experimental.pallas import tpu as pltpu


# --------------------------------------------------------------------------
# Small static helpers
# --------------------------------------------------------------------------
def _round_up(n, m):
    return ((n + m - 1) // m) * m


def _largest_divisor(n, limit, mult=8):
    """Largest d <= limit with d % mult == 0 and n % d == 0 (n is a mult of 8)."""
    d = min(limit, n)
    d -= d % mult
    while d >= mult:
        if n % d == 0:
            return d
        d -= mult
    return mult if n % mult == 0 else 1


def _band_matrix(tin, s):
    """Static (tin*s, tin+2) matrix: fused Stretch2d(s) + zero-padded box(2s+1).

    x_ext = [x[-1]; x[0..tin-1]; x[tin]]  ->  out[r*s+p] = F[r*s+p, :] @ x_ext
    """
    f = np.zeros((tin * s, tin + 2), np.float32)
    inv = 1.0 / (2 * s + 1)
    for r in range(tin):
        for p in range(s):
            f[r * s + p, r] = (s - p) * inv        # x[r-1]
            f[r * s + p, r + 1] = s * inv          # x[r]
            f[r * s + p, r + 2] = (p + 1) * inv    # x[r+1]
    return f


# --------------------------------------------------------------------------
# Kernel 1: MelResNet (conv_in -> BN -> relu -> res blocks -> conv_out)
# Grid: (batch, time_tiles).  BN scales are pre-folded into the weights.
# --------------------------------------------------------------------------
def melresnet_kernel(x_ref, win_ref, b0_ref, w1_ref, w2_ref, bsh_ref,
                     wout_ref, bout_ref, o_ref, *, res_blocks):
    x = x_ref[0]                                              # (tm, k*feat) bf16
    h = jnp.dot(x, win_ref[...], preferred_element_type=jnp.float32)
    h = jnp.maximum(h + b0_ref[...], 0.0)                     # folded BN + relu

    for r in range(res_blocks):
        h1 = jnp.dot(h.astype(jnp.bfloat16), w1_ref[r],
                     preferred_element_type=jnp.float32)
        h1 = jnp.maximum(h1 + bsh_ref[r, 0:1, :], 0.0)
        h2 = jnp.dot(h1.astype(jnp.bfloat16), w2_ref[r],
                     preferred_element_type=jnp.float32)
        h = h + h2 + bsh_ref[r, 1:2, :]

    out = jnp.dot(h.astype(jnp.bfloat16), wout_ref[...],
                  preferred_element_type=jnp.float32) + bout_ref[...]
    o_ref[0] = out.astype(o_ref.dtype)


def _melresnet(x_t, params, *, pad, t_out, tm_target=1024):
    """x_t: (B, T, feat) bf16.  Returns (B, t_out, res_out) bf16."""
    B, T, feat = x_t.shape
    k_size = 2 * pad + 1
    cc = params["win"].shape[2]
    res_out = params["wout"].shape[1]
    res_blocks = params["w1"].shape[0]

    tm = min(tm_target, _round_up(t_out, 8))
    n_t = -(-t_out // tm)
    t_pad = n_t * tm

    # im2col on the (small) mel so conv_in is a single MXU matmul.
    xp = jnp.pad(x_t, ((0, 0), (0, t_pad + 2 * pad - T), (0, 0)))
    xcol = jnp.concatenate([xp[:, j:j + t_pad, :] for j in range(k_size)],
                           axis=-1)                           # (B, t_pad, k*feat)

    # Fold BN scales into the weights (one-time O(cc^2) op on weights).
    win_f = (params["win"] * params["bn0_scale"]).reshape(
        k_size * feat, cc).astype(jnp.bfloat16)
    w1f = (params["w1"] * params["s1"]).astype(jnp.bfloat16)
    w2f = (params["w2"] * params["s2"]).astype(jnp.bfloat16)
    bsh = jnp.concatenate([params["b1"], params["b2"]], axis=1)   # (R, 2, cc) f32
    wout = params["wout"].astype(jnp.bfloat16)
    bout = params["bout"]
    b0 = params["bn0_shift"]

    def whole(a):
        nd = a.ndim
        return pl.BlockSpec(a.shape, lambda b, i: (0,) * nd)

    aux_pad = pl.pallas_call(
        functools.partial(melresnet_kernel, res_blocks=res_blocks),
        out_shape=jax.ShapeDtypeStruct((B, t_pad, res_out), jnp.bfloat16),
        grid=(B, n_t),
        in_specs=[pl.BlockSpec((1, tm, k_size * feat), lambda b, i: (b, i, 0)),
                  whole(win_f), whole(b0), whole(w1f), whole(w2f),
                  whole(bsh), whole(wout), whole(bout)],
        out_specs=pl.BlockSpec((1, tm, res_out), lambda b, i: (b, i, 0)),
        compiler_params=pltpu.CompilerParams(
            dimension_semantics=("parallel", "parallel"),
            vmem_limit_bytes=32 * 1024 * 1024),
    )(xcol, win_f, b0, w1f, w2f, bsh, wout, bout)
    return aux_pad[:, :t_out, :]


# --------------------------------------------------------------------------
# Kernel 2: one fused upsample level (Stretch2d(s) + box conv) as banded matmul.
# Grid: (batch, blocks).  Each grid block reads block_in compact rows (+2 halo
# rows from a tiny side array) and writes block_in*s expanded rows directly.
# --------------------------------------------------------------------------
def up_level_kernel(x_ref, halo_ref, f_ref, o_ref, *, s, tin, m, block_in,
                    true_len, need_mask):
    i = pl.program_id(1)
    base_row = i * block_in

    def rows(lo, hi):
        v = x_ref[0, lo:hi, :]
        if need_mask:      # rows >= true_len must act as the conv's zero padding
            g = lax.broadcasted_iota(jnp.int32, (hi - lo, 1), 0) + (base_row + lo)
            v = jnp.where(g < true_len, v, jnp.zeros_like(v))
        return v

    prv = halo_ref[0, 0, 0:1, :]                   # x[block_start - 1] (0 at edge)
    nxt = halo_ref[0, 0, 1:2, :]                   # x[block_end]       (0 at edge)
    f = f_ref[...]                                 # (tin*s, tin+2) bf16

    for j in range(m):                             # static unroll over sub-tiles
        top = prv if j == 0 else rows(j * tin - 1, j * tin)
        mid = rows(j * tin, (j + 1) * tin)
        bot = nxt if j == m - 1 else rows((j + 1) * tin, (j + 1) * tin + 1)
        xe = jnp.concatenate([top, mid, bot], axis=0)          # (tin+2, C)
        out = jnp.dot(f, xe, preferred_element_type=jnp.float32)
        o_ref[0, j * tin * s:(j + 1) * tin * s, :] = out.astype(o_ref.dtype)


def _build_halo(x, block_rows, n_blocks, true_len):
    """(B, n_blocks, 2, C): [x[i*block-1], x[(i+1)*block]] per block, 0 at edges."""
    B, _, C = x.shape
    z = jnp.zeros((B, 1, C), x.dtype)
    if n_blocks > 1:
        prev_body = x[:, block_rows - 1:(n_blocks - 1) * block_rows:block_rows, :]
        prev = jnp.concatenate([z, prev_body], axis=1)
    else:
        prev = z
    k = -(-true_len // block_rows) - 1             # valid "next" rows (< true_len)
    if k > 0:
        nxt_body = x[:, block_rows:k * block_rows + 1:block_rows, :]
        nxt = jnp.concatenate(
            [nxt_body, jnp.zeros((B, n_blocks - k, C), x.dtype)], axis=1)
    else:
        nxt = jnp.zeros((B, n_blocks, C), x.dtype)
    return jnp.stack([prev, nxt], axis=2)


def _up_level(x, s, true_len, *, target_out_rows=8192):
    """x: (B, Ls, C) bf16 stored signal (Ls multiple of 8, >= true_len)."""
    B, Ls, C = x.shape
    target_in = max(8, (target_out_rows // s) // 8 * 8)
    block_in = _largest_divisor(Ls, target_in)
    if B * (Ls // block_in) < 2 and Ls >= 16:      # keep both v7x cores busy
        block_in = _largest_divisor(Ls, max(8, Ls // 2))
    n = Ls // block_in
    tin = _largest_divisor(block_in, 248)          # K = tin+2 <= 256 per sub-matmul
    m = block_in // tin

    f_mat = jnp.asarray(_band_matrix(tin, s), dtype=jnp.bfloat16)
    halo = _build_halo(x, block_in, n, true_len)

    out = pl.pallas_call(
        functools.partial(up_level_kernel, s=s, tin=tin, m=m, block_in=block_in,
                          true_len=true_len, need_mask=(Ls != true_len)),
        out_shape=jax.ShapeDtypeStruct((B, Ls * s, C), jnp.bfloat16),
        grid=(B, n),
        in_specs=[pl.BlockSpec((1, block_in, C), lambda b, i: (b, i, 0)),
                  pl.BlockSpec((1, 1, 2, C), lambda b, i: (b, i, 0, 0)),
                  pl.BlockSpec((tin * s, tin + 2), lambda b, i: (0, 0))],
        out_specs=pl.BlockSpec((1, block_in * s, C), lambda b, i: (b, i, 0)),
        compiler_params=pltpu.CompilerParams(
            dimension_semantics=("parallel", "parallel"),
            vmem_limit_bytes=32 * 1024 * 1024),
    )(x, halo, f_mat)
    return out, true_len * s


# --------------------------------------------------------------------------
# Wrapper
# --------------------------------------------------------------------------
def upsample_network_forward(m_bct, params, *, upsample_scales, pad,
                             target_out_rows=8192):
    """m_bct: (B, feat_dims, T) like the PyTorch input.  Returns bf16 outputs."""
    B, feat, T = m_bct.shape
    total_scale = int(np.prod(upsample_scales))
    indent = pad * total_scale
    t_out = T - 2 * pad

    x_t = jnp.transpose(m_bct, (0, 2, 1)).astype(jnp.bfloat16)     # (B, T, feat)

    # --- MelResNet + resnet_stretch ---
    aux = _melresnet(x_t, params, pad=pad, t_out=t_out)            # (B, t_out, ro)
    # TODO(synk): if the consumer can index aux per sample, skip this expansion.
    aux_up = jnp.repeat(aux, total_scale, axis=1)                  # bf16

    # --- up_layers chain: each level fuses Stretch2d(s) + box Conv2d ---
    stored = _round_up(T, 64)                      # tiny pad of the mel only
    y = jnp.pad(x_t, ((0, 0), (0, stored - T), (0, 0)))
    true_len = T
    for s in upsample_scales:
        y, true_len = _up_level(y, int(s), true_len,
                                target_out_rows=target_out_rows)
    m_up = y[:, indent:T * total_scale - indent, :]

    # PyTorch returns (m.transpose(1,2), aux.transpose(1,2)) -> already time-major
    return m_up, aux_up


# --------------------------------------------------------------------------
# Deterministic parameter init (shapes implied by the module __init__)
# --------------------------------------------------------------------------
def init_params(key, feat_dims, compute_dims, res_blocks, res_out_dims, pad):
    k_size = 2 * pad + 1
    keys = iter(jax.random.split(key, 64))

    def nrm(shape, scale=0.2):
        return scale * jax.random.normal(next(keys), shape, jnp.float32)

    def bn(c):
        gamma = 1.0 + 0.1 * jax.random.normal(next(keys), (c,), jnp.float32)
        beta = 0.1 * jax.random.normal(next(keys), (c,), jnp.float32)
        mean = 0.1 * jax.random.normal(next(keys), (c,), jnp.float32)
        var = 1.0 + 0.1 * jax.random.uniform(next(keys), (c,), jnp.float32)
        scale = gamma / jnp.sqrt(var + 1e-5)
        shift = beta - mean * scale
        return scale.reshape(1, c), shift.reshape(1, c)

    win = nrm((k_size, feat_dims, compute_dims))          # conv_in: W[j] = w[:, :, j].T
    bn0_scale, bn0_shift = bn(compute_dims)
    w1, s1, b1, w2, s2, b2 = [], [], [], [], [], []
    for _ in range(res_blocks):
        w1.append(nrm((compute_dims, compute_dims)))
        s, b = bn(compute_dims); s1.append(s); b1.append(b)
        w2.append(nrm((compute_dims, compute_dims)))
        s, b = bn(compute_dims); s2.append(s); b2.append(b)
    wout = nrm((compute_dims, res_out_dims))
    bout = nrm((1, res_out_dims))
    return dict(win=win, bn0_scale=bn0_scale, bn0_shift=bn0_shift,
                w1=jnp.stack(w1), s1=jnp.stack(s1), b1=jnp.stack(b1),
                w2=jnp.stack(w2), s2=jnp.stack(s2), b2=jnp.stack(b2),
                wout=wout, bout=bout)


# --------------------------------------------------------------------------
# Pure-JAX f32 reference (same math, used only for correctness checking)
# --------------------------------------------------------------------------
def reference_forward(m_bct, params, upsample_scales, pad):
    B, feat, T = m_bct.shape
    x = jnp.transpose(m_bct, (0, 2, 1))
    k_size = params["win"].shape[0]
    t_out = T - 2 * pad
    h = jnp.zeros((B, t_out, params["win"].shape[2]), jnp.float32)
    for j in range(k_size):
        h = h + jnp.einsum("btc,cd->btd", x[:, j:j + t_out, :], params["win"][j])
    h = jax.nn.relu(h * params["bn0_scale"] + params["bn0_shift"])
    for i in range(params["w1"].shape[0]):
        h1 = jax.nn.relu(jnp.einsum("btc,cd->btd", h, params["w1"][i])
                         * params["s1"][i] + params["b1"][i])
        h2 = (jnp.einsum("btc,cd->btd", h1, params["w2"][i])
              * params["s2"][i] + params["b2"][i])
        h = h + h2
    aux = jnp.einsum("btc,cd->btd", h, params["wout"]) + params["bout"]
    total = int(np.prod(upsample_scales))
    aux_up = jnp.repeat(aux, total, axis=1)

    y = x
    for s in upsample_scales:
        y = jnp.repeat(y, s, axis=1)
        tn = y.shape[1]
        yp = jnp.pad(y, ((0, 0), (s, s), (0, 0)))
        acc = jnp.zeros_like(y)
        for d in range(2 * s + 1):
            acc = acc + yp[:, d:d + tn, :]
        y = acc / float(2 * s + 1)
    indent = pad * total
    y = y[:, indent:y.shape[1] - indent, :]
    return y, aux_up


if __name__ == "__main__":
    # Small shapes consistent with the module
    B, feat_dims, T = 2, 16, 12
    upsample_scales = (2, 2)
    compute_dims, res_blocks, res_out_dims, pad = 32, 2, 16, 2

    key = jax.random.PRNGKey(0)
    k_par, k_in = jax.random.split(key)
    params = init_params(k_par, feat_dims, compute_dims, res_blocks, res_out_dims, pad)
    m = jax.random.normal(k_in, (B, feat_dims, T), jnp.float32)     # PyTorch NCW input

    fwd = jax.jit(functools.partial(upsample_network_forward,
                                    upsample_scales=upsample_scales, pad=pad))
    m_up, aux_up = fwd(m, params)
    m_up = jax.block_until_ready(m_up)
    aux_up = jax.block_until_ready(aux_up)

    m_ref, aux_ref = reference_forward(m, params, upsample_scales, pad)
    # bf16 compute / storage vs f32 reference -> loose-but-meaningful tolerances.
    np.testing.assert_allclose(np.asarray(m_up.astype(jnp.float32)),
                               np.asarray(m_ref), rtol=5e-2, atol=1e-1)
    np.testing.assert_allclose(np.asarray(aux_up.astype(jnp.float32)),
                               np.asarray(aux_ref), rtol=5e-2, atol=1e-1)

    print("KERNEL_OK")
</pallas_src>

<mosaic_0001>
module attributes {stable_mosaic.version = 11 : i64} {
  func.func @up_level_kernel(%arg0: i32, %arg1: i32, %arg2: memref<1x64x16xbf16, #tpu.memory_space<vmem>>, %arg3: memref<1x1x2x16xbf16, #tpu.memory_space<vmem>>, %arg4: memref<128x66xbf16, #tpu.memory_space<vmem>>, %arg5: memref<1x128x16xbf16, #tpu.memory_space<vmem>>) attributes {dimension_semantics = [#tpu.dimension_semantics<parallel>, #tpu.dimension_semantics<parallel>], iteration_bounds = array<i64: 2, 1>, scalar_prefetch = 0 : i64, scratch_operands = 0 : i64, tpu.core_type = #tpu.core_type<tc>, window_params = [{transform_indices = @transform_0, window_bounds = array<i64: 1, 64, 16>}, {transform_indices = @transform_1, window_bounds = array<i64: 1, 1, 2, 16>}, {pipeline_mode = #tpu.pipeline_mode<synchronous>, transform_indices = @transform_2, window_bounds = array<i64: 128, 66>}, {transform_indices = @transform_3, window_bounds = array<i64: 1, 128, 16>}]} {
    %c64_i32 = arith.constant 64 : i32
    %0 = arith.muli %arg1, %c64_i32 : i32
    %c0 = arith.constant 0 : index
    %c0_0 = arith.constant 0 : index
    %c0_1 = arith.constant 0 : index
    %c0_2 = arith.constant 0 : index
    %1 = vector.load %arg3[%c0, %c0_0, %c0_1, %c0_2] : memref<1x1x2x16xbf16, #tpu.memory_space<vmem>>, vector<1x1x1x16xbf16>
    %2 = vector.shape_cast %1 : vector<1x1x1x16xbf16> to vector<1x16xbf16>
    %c0_3 = arith.constant 0 : index
    %c0_4 = arith.constant 0 : index
    %c1 = arith.constant 1 : index
    %c0_5 = arith.constant 0 : index
    %3 = vector.load %arg3[%c0_3, %c0_4, %c1, %c0_5] : memref<1x1x2x16xbf16, #tpu.memory_space<vmem>>, vector<1x1x1x16xbf16>
    %4 = vector.shape_cast %3 : vector<1x1x1x16xbf16> to vector<1x16xbf16>
    %c0_6 = arith.constant 0 : index
    %c0_7 = arith.constant 0 : index
    %5 = vector.load %arg4[%c0_6, %c0_7] : memref<128x66xbf16, #tpu.memory_space<vmem>>, vector<128x66xbf16>
    %c0_8 = arith.constant 0 : index
    %c0_9 = arith.constant 0 : index
    %c0_10 = arith.constant 0 : index
    %6 = vector.load %arg2[%c0_8, %c0_9, %c0_10] : memref<1x64x16xbf16, #tpu.memory_space<vmem>>, vector<1x64x16xbf16>
    %7 = vector.shape_cast %6 : vector<1x64x16xbf16> to vector<64x16xbf16>
    %8 = tpu.iota {dimensions = array<i32: 0>} : vector<64x1xi32>
    %c0_i32 = arith.constant 0 : i32
    %9 = arith.addi %0, %c0_i32 : i32
    %10 = vector.broadcast %9 : i32 to vector<64x1xi32>
    %11 = arith.addi %8, %10 : vector<64x1xi32>
    %c12_i32 = arith.constant 12 : i32
    %12 = vector.broadcast %c12_i32 : i32 to vector<64x1xi32>
    %13 = arith.cmpi slt, %11, %12 : vector<64x1xi32>
    %cst = arith.constant 0.000000e+00 : bf16
    %14 = vector.broadcast %cst : bf16 to vector<64x16xbf16>
    %15 = vector.shape_cast %13 : vector<64x1xi1> to vector<64x1xi1>
    %16 = vector.broadcast %15 : vector<64x1xi1> to vector<64x16xi1>
    %17 = arith.select %16, %7, %14 : vector<64x16xi1>, vector<64x16xbf16>
    %18 = tpu.concatenate %2, %17, %4 in 0 : vector<1x16xbf16>, vector<64x16xbf16>, vector<1x16xbf16> -> vector<66x16xbf16>
    %cst_11 = arith.constant dense<0.000000e+00> : vector<128x16xf32>
    %19 = tpu.matmul %5, %18, %cst_11 {dimension_numbers = #tpu.dot_dimension_numbers<[1], [0], [0], [1], [0, 0, 1, 1], [], []>} : vector<128x66xbf16>, vector<66x16xbf16>, vector<128x16xf32> -> vector<128x16xf32>
    %20 = arith.truncf %19 : vector<128x16xf32> to vector<128x16xbf16>
    %c0_12 = arith.constant 0 : index
    %c0_13 = arith.constant 0 : index
    %c0_14 = arith.constant 0 : index
    %21 = vector.load %arg5[%c0_12, %c0_13, %c0_14] : memref<1x128x16xbf16, #tpu.memory_space<vmem>>, vector<1x128x16xbf16>
    %22 = vector.shape_cast %21 : vector<1x128x16xbf16> to vector<128x16xbf16>
    %23 = vector.shape_cast %20 : vector<128x16xbf16> to vector<1x128x16xbf16>
    tpu.vector_store %arg5[%c0_12, %c0_13, %c0_14], %23 {strides = array<i32>} : memref<1x128x16xbf16, #tpu.memory_space<vmem>>, vector<1x128x16xbf16>,
    return
  }
  func.func @transform_0(%arg0: i32, %arg1: i32) -> (i32, i32, i32) {
    %c0_i32 = arith.constant 0 : i32
    %c0_i32_0 = arith.constant 0 : i32
    return %arg0, %arg1, %c0_i32 : i32, i32, i32
  }
  func.func @transform_1(%arg0: i32, %arg1: i32) -> (i32, i32, i32, i32) {
    %c0_i32 = arith.constant 0 : i32
    %c0_i32_0 = arith.constant 0 : i32
    %c0_i32_1 = arith.constant 0 : i32
    return %arg0, %arg1, %c0_i32, %c0_i32_0 : i32, i32, i32, i32
  }
  func.func @transform_2(%arg0: i32, %arg1: i32) -> (i32, i32) {
    %c0_i32 = arith.constant 0 : i32
    %c0_i32_0 = arith.constant 0 : i32
    %c0_i32_1 = arith.constant 0 : i32
    return %c0_i32, %c0_i32_0 : i32, i32
  }
  func.func @transform_3(%arg0: i32, %arg1: i32) -> (i32, i32, i32) {
    %c0_i32 = arith.constant 0 : i32
    %c0_i32_0 = arith.constant 0 : i32
    return %arg0, %arg1, %c0_i32 : i32, i32, i32
  }
}

module attributes {stable_mosaic.version = 11 : i64} {
  func.func @melresnet_kernel(%arg0: i32, %arg1: i32, %arg2: memref<1x8x80xbf16, #tpu.memory_space<vmem>>, %arg3: memref<80x32xbf16, #tpu.memory_space<vmem>>, %arg4: memref<1x32xf32, #tpu.memory_space<vmem>>, %arg5: memref<2x32x32xbf16, #tpu.memory_space<vmem>>, %arg6: memref<2x32x32xbf16, #tpu.memory_space<vmem>>, %arg7: memref<2x2x32xf32, #tpu.memory_space<vmem>>, %arg8: memref<32x16xbf16, #tpu.memory_space<vmem>>, %arg9: memref<1x16xf32, #tpu.memory_space<vmem>>, %arg10: memref<1x8x16xbf16, #tpu.memory_space<vmem>>) attributes {dimension_semantics = [#tpu.dimension_semantics<parallel>, #tpu.dimension_semantics<parallel>], iteration_bounds = array<i64: 2, 1>, scalar_prefetch = 0 : i64, scratch_operands = 0 : i64, tpu.core_type = #tpu.core_type<tc>, window_params = [{transform_indices = @transform_0, window_bounds = array<i64: 1, 8, 80>}, {pipeline_mode = #tpu.pipeline_mode<synchronous>, transform_indices = @transform_1, window_bounds = array<i64: 80, 32>}, {pipeline_mode = #tpu.pipeline_mode<synchronous>, transform_indices = @transform_2, window_bounds = array<i64: 1, 32>}, {pipeline_mode = #tpu.pipeline_mode<synchronous>, transform_indices = @transform_3, window_bounds = array<i64: 2, 32, 32>}, {pipeline_mode = #tpu.pipeline_mode<synchronous>, transform_indices = @transform_4, window_bounds = array<i64: 2, 32, 32>}, {pipeline_mode = #tpu.pipeline_mode<synchronous>, transform_indices = @transform_5, window_bounds = array<i64: 2, 2, 32>}, {pipeline_mode = #tpu.pipeline_mode<synchronous>, transform_indices = @transform_6, window_bounds = array<i64: 32, 16>}, {pipeline_mode = #tpu.pipeline_mode<synchronous>, transform_indices = @transform_7, window_bounds = array<i64: 1, 16>}, {transform_indices = @transform_8, window_bounds = array<i64: 1, 8, 16>}]} {
    %c0 = arith.constant 0 : index
    %c0_0 = arith.constant 0 : index
    %c0_1 = arith.constant 0 : index
    %0 = vector.load %arg2[%c0, %c0_0, %c0_1] : memref<1x8x80xbf16, #tpu.memory_space<vmem>>, vector<1x8x80xbf16>
    %1 = vector.shape_cast %0 : vector<1x8x80xbf16> to vector<8x80xbf16>
    %c0_2 = arith.constant 0 : index
    %c0_3 = arith.constant 0 : index
    %2 = vector.load %arg3[%c0_2, %c0_3] : memref<80x32xbf16, #tpu.memory_space<vmem>>, vector<80x32xbf16>
    %cst = arith.constant dense<0.000000e+00> : vector<8x32xf32>
    %3 = tpu.matmul %1, %2, %cst {dimension_numbers = #tpu.dot_dimension_numbers<[1], [0], [0], [1], [0, 0, 1, 1], [], []>} : vector<8x80xbf16>, vector<80x32xbf16>, vector<8x32xf32> -> vector<8x32xf32>
    %c0_4 = arith.constant 0 : index
    %c0_5 = arith.constant 0 : index
    %4 = vector.load %arg4[%c0_4, %c0_5] : memref<1x32xf32, #tpu.memory_space<vmem>>, vector<1x32xf32>
    %5 = vector.broadcast %4 : vector<1x32xf32> to vector<8x32xf32>
    %6 = arith.addf %3, %5 : vector<8x32xf32>
    %cst_6 = arith.constant 0.000000e+00 : f32
    %7 = vector.broadcast %cst_6 : f32 to vector<8x32xf32>
    %8 = arith.maximumf %6, %7 : vector<8x32xf32>
    %9 = arith.truncf %8 : vector<8x32xf32> to vector<8x32xbf16>
    %c0_7 = arith.constant 0 : index
    %c0_8 = arith.constant 0 : index
    %c0_9 = arith.constant 0 : index
    %10 = vector.load %arg5[%c0_7, %c0_8, %c0_9] : memref<2x32x32xbf16, #tpu.memory_space<vmem>>, vector<1x32x32xbf16>
    %11 = vector.shape_cast %10 : vector<1x32x32xbf16> to vector<32x32xbf16>
    %cst_10 = arith.constant dense<0.000000e+00> : vector<8x32xf32>
    %12 = tpu.matmul %9, %11, %cst_10 {dimension_numbers = #tpu.dot_dimension_numbers<[1], [0], [0], [1], [0, 0, 1, 1], [], []>} : vector<8x32xbf16>, vector<32x32xbf16>, vector<8x32xf32> -> vector<8x32xf32>
    %c0_11 = arith.constant 0 : index
    %c0_12 = arith.constant 0 : index
    %c0_13 = arith.constant 0 : index
    %13 = vector.load %arg7[%c0_11, %c0_12, %c0_13] : memref<2x2x32xf32, #tpu.memory_space<vmem>>, vector<1x1x32xf32>
    %14 = vector.shape_cast %13 : vector<1x1x32xf32> to vector<1x32xf32>
    %15 = vector.broadcast %14 : vector<1x32xf32> to vector<8x32xf32>
    %16 = arith.addf %12, %15 : vector<8x32xf32>
    %cst_14 = arith.constant 0.000000e+00 : f32
    %17 = vector.broadcast %cst_14 : f32 to vector<8x32xf32>
    %18 = arith.maximumf %16, %17 : vector<8x32xf32>
    %19 = arith.truncf %18 : vector<8x32xf32> to vector<8x32xbf16>
    %c0_15 = arith.constant 0 : index
    %c0_16 = arith.constant 0 : index
    %c0_17 = arith.constant 0 : index
    %20 = vector.load %arg6[%c0_15, %c0_16, %c0_17] : memref<2x32x32xbf16, #tpu.memory_space<vmem>>, vector<1x32x32xbf16>
    %21 = vector.shape_cast %20 : vector<1x32x32xbf16> to vector<32x32xbf16>
    %cst_18 = arith.constant dense<0.000000e+00> : vector<8x32xf32>
    %22 = tpu.matmul %19, %21, %cst_18 {dimension_numbers = #tpu.dot_dimension_numbers<[1], [0], [0], [1], [0, 0, 1, 1], [], []>} : vector<8x32xbf16>, vector<32x32xbf16>, vector<8x32xf32> -> vector<8x32xf32>
    %23 = arith.addf %8, %22 : vector<8x32xf32>
    %c0_19 = arith.constant 0 : index
    %c1 = arith.constant 1 : index
    %c0_20 = arith.constant 0 : index
    %24 = vector.load %arg7[%c0_19, %c1, %c0_20] : memref<2x2x32xf32, #tpu.memory_space<vmem>>, vector<1x1x32xf32>
    %25 = vector.shape_cast %24 : vector<1x1x32xf32> to vector<1x32xf32>
    %26 = vector.broadcast %25 : vector<1x32xf32> to vector<8x32xf32>
    %27 = arith.addf %23, %26 : vector<8x32xf32>
    %28 = arith.truncf %27 : vector<8x32xf32> to vector<8x32xbf16>
    %c1_21 = arith.constant 1 : index
    %c0_22 = arith.constant 0 : index
    %c0_23 = arith.constant 0 : index
    %29 = vector.load %arg5[%c1_21, %c0_22, %c0_23] : memref<2x32x32xbf16, #tpu.memory_space<vmem>>, vector<1x32x32xbf16>
    %30 = vector.shape_cast %29 : vector<1x32x32xbf16> to vector<32x32xbf16>
    %cst_24 = arith.constant dense<0.000000e+00> : vector<8x32xf32>
    %31 = tpu.matmul %28, %30, %cst_24 {dimension_numbers = #tpu.dot_dimension_numbers<[1], [0], [0], [1], [0, 0, 1, 1], [], []>} : vector<8x32xbf16>, vector<32x32xbf16>, vector<8x32xf32> -> vector<8x32xf32>
    %c1_25 = arith.constant 1 : index
    %c0_26 = arith.constant 0 : index
    %c0_27 = arith.constant 0 : index
    %32 = vector.load %arg7[%c1_25, %c0_26, %c0_27] : memref<2x2x32xf32, #tpu.memory_space<vmem>>, vector<1x1x32xf32>
    %33 = vector.shape_cast %32 : vector<1x1x32xf32> to vector<1x32xf32>
    %34 = vector.broadcast %33 : vector<1x32xf32> to vector<8x32xf32>
    %35 = arith.addf %31, %34 : vector<8x32xf32>
    %cst_28 = arith.constant 0.000000e+00 : f32
    %36 = vector.broadcast %cst_28 : f32 to vector<8x32xf32>
    %37 = arith.maximumf %35, %36 : vector<8x32xf32>
    %38 = arith.truncf %37 : vector<8x32xf32> to vector<8x32xbf16>
    %c1_29 = arith.constant 1 : index
    %c0_30 = arith.constant 0 : index
    %c0_31 = arith.constant 0 : index
    %39 = vector.load %arg6[%c1_29, %c0_30, %c0_31] : memref<2x32x32xbf16, #tpu.memory_space<vmem>>, vector<1x32x32xbf16>
    %40 = vector.shape_cast %39 : vector<1x32x32xbf16> to vector<32x32xbf16>
    %cst_32 = arith.constant dense<0.000000e+00> : vector<8x32xf32>
    %41 = tpu.matmul %38, %40, %cst_32 {dimension_numbers = #tpu.dot_dimension_numbers<[1], [0], [0], [1], [0, 0, 1, 1], [], []>} : vector<8x32xbf16>, vector<32x32xbf16>, vector<8x32xf32> -> vector<8x32xf32>
    %42 = arith.addf %27, %41 : vector<8x32xf32>
    %c1_33 = arith.constant 1 : index
    %c1_34 = arith.constant 1 : index
    %c0_35 = arith.constant 0 : index
    %43 = vector.load %arg7[%c1_33, %c1_34, %c0_35] : memref<2x2x32xf32, #tpu.memory_space<vmem>>, vector<1x1x32xf32>
    %44 = vector.shape_cast %43 : vector<1x1x32xf32> to vector<1x32xf32>
    %45 = vector.broadcast %44 : vector<1x32xf32> to vector<8x32xf32>
    %46 = arith.addf %42, %45 : vector<8x32xf32>
    %47 = arith.truncf %46 : vector<8x32xf32> to vector<8x32xbf16>
    %c0_36 = arith.constant 0 : index
    %c0_37 = arith.constant 0 : index
    %48 = vector.load %arg8[%c0_36, %c0_37] : memref<32x16xbf16, #tpu.memory_space<vmem>>, vector<32x16xbf16>
    %cst_38 = arith.constant dense<0.000000e+00> : vector<8x16xf32>
    %49 = tpu.matmul %47, %48, %cst_38 {dimension_numbers = #tpu.dot_dimension_numbers<[1], [0], [0], [1], [0, 0, 1, 1], [], []>} : vector<8x32xbf16>, vector<32x16xbf16>, vector<8x16xf32> -> vector<8x16xf32>
    %c0_39 = arith.constant 0 : index
    %c0_40 = arith.constant 0 : index
    %50 = vector.load %arg9[%c0_39, %c0_40] : memref<1x16xf32, #tpu.memory_space<vmem>>, vector<1x16xf32>
    %51 = vector.broadcast %50 : vector<1x16xf32> to vector<8x16xf32>
    %52 = arith.addf %49, %51 : vector<8x16xf32>
    %53 = arith.truncf %52 : vector<8x16xf32> to vector<8x16xbf16>
    %c0_41 = arith.constant 0 : index
    %c0_42 = arith.constant 0 : index
    %c0_43 = arith.constant 0 : index
    %54 = vector.load %arg10[%c0_41, %c0_42, %c0_43] : memref<1x8x16xbf16, #tpu.memory_space<vmem>>, vector<1x8x16xbf16>
    %55 = vector.shape_cast %54 : vector<1x8x16xbf16> to vector<8x16xbf16>
    %56 = vector.shape_cast %53 : vector<8x16xbf16> to vector<1x8x16xbf16>
    tpu.vector_store %arg10[%c0_41, %c0_42, %c0_43], %56 {strides = array<i32>} : memref<1x8x16xbf16, #tpu.memory_space<vmem>>, vector<1x8x16xbf16>,
    return
  }
  func.func @transform_0(%arg0: i32, %arg1: i32) -> (i32, i32, i32) {
    %c0_i32 = arith.constant 0 : i32
    %c0_i32_0 = arith.constant 0 : i32
    return %arg0, %arg1, %c0_i32 : i32, i32, i32
  }
  func.func @transform_1(%arg0: i32, %arg1: i32) -> (i32, i32) {
    %c0_i32 = arith.constant 0 : i32
    %c0_i32_0 = arith.constant 0 : i32
    %c0_i32_1 = arith.constant 0 : i32
    return %c0_i32, %c0_i32_0 : i32, i32
  }
  func.func @transform_2(%arg0: i32, %arg1: i32) -> (i32, i32) {
    %c0_i32 = arith.constant 0 : i32
    %c0_i32_0 = arith.constant 0 : i32
    %c0_i32_1 = arith.constant 0 : i32
    return %c0_i32, %c0_i32_0 : i32, i32
  }
  func.func @transform_3(%arg0: i32, %arg1: i32) -> (i32, i32, i32) {
    %c0_i32 = arith.constant 0 : i32
    %c0_i32_0 = arith.constant 0 : i32
    %c0_i32_1 = arith.constant 0 : i32
    %c0_i32_2 = arith.constant 0 : i32
    return %c0_i32, %c0_i32_0, %c0_i32_1 : i32, i32, i32
  }
  func.func @transform_4(%arg0: i32, %arg1: i32) -> (i32, i32, i32) {
    %c0_i32 = arith.constant 0 : i32
    %c0_i32_0 = arith.constant 0 : i32
    %c0_i32_1 = arith.constant 0 : i32
    %c0_i32_2 = arith.constant 0 : i32
    return %c0_i32, %c0_i32_0, %c0_i32_1 : i32, i32, i32
  }
  func.func @transform_5(%arg0: i32, %arg1: i32) -> (i32, i32, i32) {
    %c0_i32 = arith.constant 0 : i32
    %c0_i32_0 = arith.constant 0 : i32
    %c0_i32_1 = arith.constant 0 : i32
    %c0_i32_2 = arith.constant 0 : i32
    return %c0_i32, %c0_i32_0, %c0_i32_1 : i32, i32, i32
  }
  func.func @transform_6(%arg0: i32, %arg1: i32) -> (i32, i32) {
    %c0_i32 = arith.constant 0 : i32
    %c0_i32_0 = arith.constant 0 : i32
    %c0_i32_1 = arith.constant 0 : i32
    return %c0_i32, %c0_i32_0 : i32, i32
  }
  func.func @transform_7(%arg0: i32, %arg1: i32) -> (i32, i32) {
    %c0_i32 = arith.constant 0 : i32
    %c0_i32_0 = arith.constant 0 : i32
    %c0_i32_1 = arith.constant 0 : i32
    return %c0_i32, %c0_i32_0 : i32, i32
  }
  func.func @transform_8(%arg0: i32, %arg1: i32) -> (i32, i32, i32) {
    %c0_i32 = arith.constant 0 : i32
    %c0_i32_0 = arith.constant 0 : i32
    return %arg0, %arg1, %c0_i32 : i32, i32, i32
  }
}

module attributes {stable_mosaic.version = 11 : i64} {
  func.func @up_level_kernel(%arg0: i32, %arg1: i32, %arg2: memref<1x128x16xbf16, #tpu.memory_space<vmem>>, %arg3: memref<1x1x2x16xbf16, #tpu.memory_space<vmem>>, %arg4: memref<256x130xbf16, #tpu.memory_space<vmem>>, %arg5: memref<1x256x16xbf16, #tpu.memory_space<vmem>>) attributes {dimension_semantics = [#tpu.dimension_semantics<parallel>, #tpu.dimension_semantics<parallel>], iteration_bounds = array<i64: 2, 1>, scalar_prefetch = 0 : i64, scratch_operands = 0 : i64, tpu.core_type = #tpu.core_type<tc>, window_params = [{transform_indices = @transform_0, window_bounds = array<i64: 1, 128, 16>}, {transform_indices = @transform_1, window_bounds = array<i64: 1, 1, 2, 16>}, {pipeline_mode = #tpu.pipeline_mode<synchronous>, transform_indices = @transform_2, window_bounds = array<i64: 256, 130>}, {transform_indices = @transform_3, window_bounds = array<i64: 1, 256, 16>}]} {
    %c128_i32 = arith.constant 128 : i32
    %0 = arith.muli %arg1, %c128_i32 : i32
    %c0 = arith.constant 0 : index
    %c0_0 = arith.constant 0 : index
    %c0_1 = arith.constant 0 : index
    %c0_2 = arith.constant 0 : index
    %1 = vector.load %arg3[%c0, %c0_0, %c0_1, %c0_2] : memref<1x1x2x16xbf16, #tpu.memory_space<vmem>>, vector<1x1x1x16xbf16>
    %2 = vector.shape_cast %1 : vector<1x1x1x16xbf16> to vector<1x16xbf16>
    %c0_3 = arith.constant 0 : index
    %c0_4 = arith.constant 0 : index
    %c1 = arith.constant 1 : index
    %c0_5 = arith.constant 0 : index
    %3 = vector.load %arg3[%c0_3, %c0_4, %c1, %c0_5] : memref<1x1x2x16xbf16, #tpu.memory_space<vmem>>, vector<1x1x1x16xbf16>
    %4 = vector.shape_cast %3 : vector<1x1x1x16xbf16> to vector<1x16xbf16>
    %c0_6 = arith.constant 0 : index
    %c0_7 = arith.constant 0 : index
    %5 = vector.load %arg4[%c0_6, %c0_7] : memref<256x130xbf16, #tpu.memory_space<vmem>>, vector<256x130xbf16>
    %c0_8 = arith.constant 0 : index
    %c0_9 = arith.constant 0 : index
    %c0_10 = arith.constant 0 : index
    %6 = vector.load %arg2[%c0_8, %c0_9, %c0_10] : memref<1x128x16xbf16, #tpu.memory_space<vmem>>, vector<1x128x16xbf16>
    %7 = vector.shape_cast %6 : vector<1x128x16xbf16> to vector<128x16xbf16>
    %8 = tpu.iota {dimensions = array<i32: 0>} : vector<128x1xi32>
    %c0_i32 = arith.constant 0 : i32
    %9 = arith.addi %0, %c0_i32 : i32
    %10 = vector.broadcast %9 : i32 to vector<128x1xi32>
    %11 = arith.addi %8, %10 : vector<128x1xi32>
    %c24_i32 = arith.constant 24 : i32
    %12 = vector.broadcast %c24_i32 : i32 to vector<128x1xi32>
    %13 = arith.cmpi slt, %11, %12 : vector<128x1xi32>
    %cst = arith.constant 0.000000e+00 : bf16
    %14 = vector.broadcast %cst : bf16 to vector<128x16xbf16>
    %15 = vector.shape_cast %13 : vector<128x1xi1> to vector<128x1xi1>
    %16 = vector.broadcast %15 : vector<128x1xi1> to vector<128x16xi1>
    %17 = arith.select %16, %7, %14 : vector<128x16xi1>, vector<128x16xbf16>
    %18 = tpu.concatenate %2, %17, %4 in 0 : vector<1x16xbf16>, vector<128x16xbf16>, vector<1x16xbf16> -> vector<130x16xbf16>
    %cst_11 = arith.constant dense<0.000000e+00> : vector<256x16xf32>
    %19 = tpu.matmul %5, %18, %cst_11 {dimension_numbers = #tpu.dot_dimension_numbers<[1], [0], [0], [1], [0, 0, 1, 1], [], []>} : vector<256x130xbf16>, vector<130x16xbf16>, vector<256x16xf32> -> vector<256x16xf32>
    %20 = arith.truncf %19 : vector<256x16xf32> to vector<256x16xbf16>
    %c0_12 = arith.constant 0 : index
    %c0_13 = arith.constant 0 : index
    %c0_14 = arith.constant 0 : index
    %21 = vector.load %arg5[%c0_12, %c0_13, %c0_14] : memref<1x256x16xbf16, #tpu.memory_space<vmem>>, vector<1x256x16xbf16>
    %22 = vector.shape_cast %21 : vector<1x256x16xbf16> to vector<256x16xbf16>
    %23 = vector.shape_cast %20 : vector<256x16xbf16> to vector<1x256x16xbf16>
    tpu.vector_store %arg5[%c0_12, %c0_13, %c0_14], %23 {strides = array<i32>} : memref<1x256x16xbf16, #tpu.memory_space<vmem>>, vector<1x256x16xbf16>,
    return
  }
  func.func @transform_0(%arg0: i32, %arg1: i32) -> (i32, i32, i32) {
    %c0_i32 = arith.constant 0 : i32
    %c0_i32_0 = arith.constant 0 : i32
    return %arg0, %arg1, %c0_i32 : i32, i32, i32
  }
  func.func @transform_1(%arg0: i32, %arg1: i32) -> (i32, i32, i32, i32) {
    %c0_i32 = arith.constant 0 : i32
    %c0_i32_0 = arith.constant 0 : i32
    %c0_i32_1 = arith.constant 0 : i32
    return %arg0, %arg1, %c0_i32, %c0_i32_0 : i32, i32, i32, i32
  }
  func.func @transform_2(%arg0: i32, %arg1: i32) -> (i32, i32) {
    %c0_i32 = arith.constant 0 : i32
    %c0_i32_0 = arith.constant 0 : i32
    %c0_i32_1 = arith.constant 0 : i32
    return %c0_i32, %c0_i32_0 : i32, i32
  }
  func.func @transform_3(%arg0: i32, %arg1: i32) -> (i32, i32, i32) {
    %c0_i32 = arith.constant 0 : i32
    %c0_i32_0 = arith.constant 0 : i32
    return %arg0, %arg1, %c0_i32 : i32, i32, i32
  }
}

</mosaic_0001>

<bundles_post_ra>
// kernel: upsample_network_forward.4
= control target key start
LH: loop header
LB: loop body
LE: loop exit
PB: predicated region body
PF: predicated region fallthrough
CT: control target
= control target key end

     0   :  { %s923_s12 = smov 0   ;;  %s925_s13 = smov 0   ;;  %s1068_s0 = inlined_call_operand.vmem [shape: bf16[2,64,16], index: 0, kind: input, shape index: {}]   ;;  %s1069_s1 = inlined_call_operand.vmem [shape: bf16[2,1,2,16], index: 1, kind: input, shape index: {}]   ;;  %s1070_s2 = inlined_call_operand.vmem [shape: bf16[128,66], index: 2, kind: input, shape index: {}]   ;;  %s1071_s3 = inlined_call_operand.vmem [shape: bf16[2,128,16], index: 3, kind: output, shape index: {}]  }
   0x1   :  { %s927_s14 = smov 0  }
   0x2 LB: > { %s25_s15 = sadd.s32 1, %s895_s13  ;;  %p731_p0 = scmp.ge.s32.totalorder %s899_s14, 1  ;;  %s899_s14 = sphi %s927_s14, %s13_s14   ;;  %s895_s13 = sphi %s925_s13, %s1079_s13   ;;  %s891_s12 = sphi %s923_s12, %s1078_s12  }
   0x3   : > { %p27_p1 = scmp.ge.s32.totalorder %s25_s15, 2  ;;  %p171_p2 = scmp.lt.s32.totalorder %s899_s14, 3 }
   0x5   : > { %s1081_s15 = smov (%p27_p1, %s25_s15), 0  ;;  %p172_p3 = pnand %p731_p0, %p171_p2 }
   0x6   : > { %p210_p4 = scmp.lt.s32.totalorder (!%p172_p3), %s891_s12, 1  ;;  %v262_v0 = vlaneseq (!%p172_p3)  ;;  %v869_v1 = vld [vmem:[%s1070_s2] sm:$0xff] (!%p172_p3)   ;;  %vm421_vm0 = vcmask (!%p172_p3), 539648   ;;  %vm901_vm1 = vmmov (!%p172_p3), 1   ;;  %vm340_vm3 = vsmask.f32 (!%p172_p3), 256 }
   0x7   : > { %175 = sbr.rel (%p172_p3) target bundleno = 274 (0x112), region = 32  ;;  %815 = vmatprep.mubr.msk.bf16.mxu0 (!%p172_p3), %vm421_vm0, %v869_v1  ;;  %v870_v3 = vld [vmem:[%s1070_s2 + $0x20] sm:$0xff] (!%p172_p3)   ;;  %vm951_vm2 = vmpackc.low (!%p172_p3), %vm901_vm1, %vm901_vm1  ;;  %vm902_vm4 = vmmov (!%p172_p3), 0   ;;  %vm377_vm8 = vcmask (!%p172_p3), 1040384   ;;  %v871_v51 = vld [vmem:[%s1070_s2 + $0x8] sm:$0xff] (!%p172_p3)   ;;  %vm611_vm10 = vcmask (!%p172_p3), 125952  }
   0x8   : > { %v263_v2 = vshrl.u32 (!%p172_p3), %v262_v0, 7  ;;  %vm958_vm5 = vmpackc.low (!%p172_p3), %vm902_vm4, %vm902_vm4  ;;  %823 = vmatprep.mubr.msk.bf16.mxu1 (!%p172_p3), %vm421_vm0, %v870_v3  ;;  %v872_v52 = vld [vmem:[%s1070_s2 + $0x28] sm:$0xff] (!%p172_p3)   ;;  %v873_v53 = vld [vmem:[%s1070_s2 + $0x10] sm:$0xff] (!%p172_p3)  }
   0x9   : > { %vm983_vm9 = vmand (!%p172_p3), %vm377_vm8, %vm340_vm3  ;;  %v874_v54 = vld [vmem:[%s1070_s2 + $0x30] sm:$0xff] (!%p172_p3)   ;;  %v875_v55 = vld [vmem:[%s1070_s2 + $0x18] sm:$0xff] (!%p172_p3)  }
   0xa   : > { %v264_v4 = vadd.s32 (!%p172_p3), 8, %v263_v2  ;;  %v876_v56 = vld [vmem:[%s1070_s2 + $0x38] sm:$0xff] (!%p172_p3)  }
   0xc   : > { %vm281_vm6 = vcmp.lt.s32.totalorder (!%p172_p3), %v264_v4, 12 }
   0xd   : > { %vm305_vm7 = vmpackc.low (!%p172_p3), %vm281_vm6, %vm281_vm6 }
   0xe   : > { %s1083_s12 = smov (!%p210_p4, %s891_s12), 1 }
   0xf   : > { %s774_s20 = sshll.u32 %s1083_s12, 5  ;;  %s224_s26 = scalar_lea.vmem %s1069_s1, %s1083_s12 }
  0x10   : > { %s217_s23 = scalar_lea.vmem %s1068_s0, %s774_s20  ;;  %v237_v28 = vld [vmem:[%s224_s26] sm:$0x1]  ;;  %s775_s16 = sshll.u32 %s1083_s12, 6 }
  0x11   : > { %v254_v7 = vld [vmem:[%s217_s23] sm:$0xf]  ;;  %v255_v8 = vld [vmem:[%s217_s23 + $0x4] sm:$0xf]  ;;  %v256_v10 = vld [vmem:[%s217_s23 + $0x8] sm:$0xf]  ;;  %s1025_s19 = scalar_lea.vmem %s1071_s3, %s775_s16 }
  0x12   : > { %v312_v9 = vsel %vm951_vm2, %v254_v7, 0  ;;  %v257_v11 = vld [vmem:[%s217_s23 + $0xc] sm:$0xf]  ;;  %v313_v12 = vsel %vm305_vm7, %v255_v8, 0  ;;  %v314_v13 = vsel %vm958_vm5, %v256_v10, 0 }
  0x13   : > { %v315_v14 = vsel %vm958_vm5, %v257_v11, 0  ;;  %v258_v15 = vld [vmem:[%s217_s23 + $0x10] sm:$0xf]  ;;  %v736_v16 = vcombine.low %v312_v9, %v313_v12  ;;  %v259_v18 = vld [vmem:[%s217_s23 + $0x14] sm:$0xf] }
  0x14   : > { %v737_v17 = vcombine.low %v314_v13, %v315_v14  ;;  %v316_v19 = vsel %vm958_vm5, %v258_v15, 0  ;;  %v260_v20 = vld [vmem:[%s217_s23 + $0x18] sm:$0xf]  ;;  %v317_v21 = vsel %vm958_vm5, %v259_v18, 0  ;;  %v261_v22 = vld [vmem:[%s217_s23 + $0x1c] sm:$0xf] }
  0x15   : > { %v318_v23 = vsel %vm958_vm5, %v260_v20, 0  ;;  %v342_v24 = vshrl.u32 %v736_v16, 16  ;;  %v345_v25 = vshll.u32 %v736_v16, 16  ;;  %v738_v29 = vcombine.low %v316_v19, %v317_v21 }
  0x16   : > { %v349_v26 = vshrl.u32 %v737_v17, 16  ;;  %v352_v27 = vshll.u32 %v737_v17, 16  ;;  %v319_v30 = vsel %vm958_vm5, %v261_v22, 0 }
  0x17   : > { %v344_v31 = vrot.slane %v342_v24, 7  ;;  %v739_v33 = vcombine.low %v318_v23, %v319_v30  ;;  %v357_v35 = vshrl.u32 %v738_v29, 16  ;;  %v360_v36 = vshll.u32 %v738_v29, 16 }
  0x18   : > { %v351_v32 = vrot.slane %v349_v26, 7 }
  0x19   : > { %v347_v37 = vor.u32 %v345_v25, %v344_v31  ;;  %v365_v39 = vshrl.u32 %v739_v33, 16  ;;  %v359_v40 = vrot.slane %v357_v35, 7  ;;  %v368_v44 = vshll.u32 %v739_v33, 16 }
  0x1a   : > { %v354_v38 = vor.u32 %v352_v27, %v351_v32 }
  0x1b   : > { %v379_v41 = vsel %vm983_vm9, %v237_v28, %v347_v37  ;;  %v367_v43 = vrot.slane %v365_v39, 7  ;;  %v362_v45 = vor.u32 %v360_v36, %v359_v40 }
  0x1c   : > { %v355_v42 = vsel %vm340_vm3, %v344_v31, %v354_v38  ;;  %805 = vmatprep.subr.bf16.mxu0 %v379_v41  ;;  %831 = vmatprep.subr.bf16.mxu1 %v379_v41 }
  0x1d   : > { %806 = vmatpush3.bf16.msra.mxu0 %v379_v41  ;;  %836 = vmatpush3.bf16.msra.mxu1 %v379_v41  ;;  %v363_v46 = vsel %vm340_vm3, %v351_v32, %v362_v45  ;;  %v370_v47 = vor.u32 %v368_v44, %v367_v43  ;;  %v380_v49 = vsel %vm983_vm9, %v367_v43, %v237_v28 }
  0x1e   : > { %807 = vmatprep.subr.bf16.mxu0 %v355_v42  ;;  %832 = vmatprep.subr.bf16.mxu1 %v355_v42  ;;  %v448_v50 = vsel %vm377_vm8, %v380_v49, 0 }
  0x1f   : > { %v371_v48 = vsel %vm340_vm3, %v359_v40, %v370_v47 }
  0x21   : > { %808 = vmatpush3.bf16.msra.mxu0 %v355_v42  ;;  %837 = vmatpush3.bf16.msra.mxu1 %v355_v42 }
  0x22   : > { %809 = vmatprep.subr.bf16.mxu0 %v363_v46  ;;  %833 = vmatprep.subr.bf16.mxu1 %v363_v46 }
  0x25   : > { %810 = vmatpush3.bf16.msra.mxu0 %v363_v46  ;;  %838 = vmatpush3.bf16.msra.mxu1 %v363_v46 }
  0x26   : > { %811 = vmatprep.subr.bf16.mxu0 %v371_v48  ;;  %834 = vmatprep.subr.bf16.mxu1 %v371_v48 }
  0x29   : > { %812 = vmatpush3.bf16.msra.mxu0 %v371_v48  ;;  %839 = vmatpush3.bf16.msra.mxu1 %v371_v48 }
  0x2a   : > { %841 = vmatprep.subr.msk.bf16.mxu0 %vm377_vm8, %v380_v49  ;;  %842 = vmatprep.subr.msk.bf16.mxu1 %vm377_vm8, %v380_v49 }
  0x2d   : > { %814 = vmatpush3.bf16.msra.mxu0 %v448_v50  ;;  %840 = vmatpush3.bf16.msra.mxu1 %v448_v50 }
  0x30   : > { %816 = vmatmul.mubr.msk.bf16.vlgmr.msra.gmra.mrb[0].mxu0 %vm421_vm0, %v871_v51  ;;  %824 = vmatmul.mubr.msk.bf16.vlgmr.msra.gmra.mrb[0].mxu1 %vm421_vm0, %v872_v52 }
  0x31   : > { %819 = vmatprep.mubr.msk.bf16.mxu0 %vm421_vm0, %v873_v53  ;;  %827 = vmatprep.mubr.msk.bf16.mxu1 %vm421_vm0, %v874_v54 }
  0x38   : > { %820 = vmatmul.mubr.msk.bf16.gmra.mrb[4].mxu0 %vm421_vm0, %v875_v55  ;;  %828 = vmatmul.mubr.msk.bf16.gmra.mrb[4].mxu1 %vm421_vm0, %v876_v56 }
 0x103   : > { %v817_v57 = vpop.f32.mrb[0].mxu0  ;;  %v825_v58 = vpop.f32.mrb[0].mxu1 }
 0x104   : > { %v778_v59 = vpack.c.bf16 %v817_v57, %v817_v57  ;;  %v786_v60 = vpack.c.bf16 %v825_v58, %v825_v58  ;;  %v484_v61 = vpop.f32.mrb[1].mxu0  ;;  %v516_v62 = vpop.f32.mrb[1].mxu1 }
 0x105   : > { %v776_v63 = vpack.c.bf16 %v484_v61, %v484_v61  ;;  %v784_v0 = vpack.c.bf16 %v516_v62, %v516_v62  ;;  %v818_v1 = vpop.f32.mrb[2].mxu0  ;;  %v826_v2 = vpop.f32.mrb[2].mxu1 }
 0x106   : > { %614 = vst.msk [vmem:[%s1025_s19 + $0x8] sm:$0xf] %vm611_vm10, %v778_v59  ;;  %622 = vst.msk [vmem:[%s1025_s19 + $0x28] sm:$0xf] %vm611_vm10, %v786_v60  ;;  %v779_v3 = vpack.c.bf16 %v818_v1, %v818_v1  ;;  %v787_v4 = vpack.c.bf16 %v826_v2, %v826_v2  ;;  %v487_v5 = vpop.f32.mrb[3].mxu0  ;;  %v519_v6 = vpop.f32.mrb[3].mxu1 }
 0x107   : > { %612 = vst.msk [vmem:[%s1025_s19] sm:$0xf] %vm611_vm10, %v776_v63  ;;  %620 = vst.msk [vmem:[%s1025_s19 + $0x20] sm:$0xf] %vm611_vm10, %v784_v0  ;;  %v777_v7 = vpack.c.bf16 %v487_v5, %v487_v5  ;;  %v785_v8 = vpack.c.bf16 %v519_v6, %v519_v6 }
 0x108   : > { %615 = vst.msk [vmem:[%s1025_s19 + $0xc] sm:$0xf] %vm611_vm10, %v779_v3  ;;  %623 = vst.msk [vmem:[%s1025_s19 + $0x2c] sm:$0xf] %vm611_vm10, %v787_v4 }
 0x109   : > { %613 = vst.msk [vmem:[%s1025_s19 + $0x4] sm:$0xf] %vm611_vm10, %v777_v7  ;;  %621 = vst.msk [vmem:[%s1025_s19 + $0x24] sm:$0xf] %vm611_vm10, %v785_v8 }
 0x10b   : > { %v821_v9 = vpop.f32.mrb[4].mxu0  ;;  %v829_v10 = vpop.f32.mrb[4].mxu1 }
 0x10c   : > { %v782_v11 = vpack.c.bf16 %v821_v9, %v821_v9  ;;  %v790_v12 = vpack.c.bf16 %v829_v10, %v829_v10  ;;  %v500_v13 = vpop.f32.mrb[5].mxu0  ;;  %v532_v14 = vpop.f32.mrb[5].mxu1 }
 0x10d   : > { %v780_v15 = vpack.c.bf16 %v500_v13, %v500_v13  ;;  %v788_v16 = vpack.c.bf16 %v532_v14, %v532_v14  ;;  %v822_v17 = vpop.f32.mrb[6].mxu0  ;;  %v830_v18 = vpop.f32.mrb[6].mxu1 }
 0x10e   : > { %618 = vst.msk [vmem:[%s1025_s19 + $0x18] sm:$0xf] %vm611_vm10, %v782_v11  ;;  %626 = vst.msk [vmem:[%s1025_s19 + $0x38] sm:$0xf] %vm611_vm10, %v790_v12  ;;  %v783_v19 = vpack.c.bf16 %v822_v17, %v822_v17  ;;  %v791_v20 = vpack.c.bf16 %v830_v18, %v830_v18  ;;  %v503_v21 = vpop.f32.mrb[7].mxu0  ;;  %v535_v22 = vpop.f32.mrb[7].mxu1 }
 0x10f   : > { %616 = vst.msk [vmem:[%s1025_s19 + $0x10] sm:$0xf] %vm611_vm10, %v780_v15  ;;  %624 = vst.msk [vmem:[%s1025_s19 + $0x30] sm:$0xf] %vm611_vm10, %v788_v16  ;;  %v781_v23 = vpack.c.bf16 %v503_v21, %v503_v21  ;;  %v789_v24 = vpack.c.bf16 %v535_v22, %v535_v22 }
 0x110   : > { %619 = vst.msk [vmem:[%s1025_s19 + $0x1c] sm:$0xf] %vm611_vm10, %v783_v19  ;;  %627 = vst.msk [vmem:[%s1025_s19 + $0x3c] sm:$0xf] %vm611_vm10, %v791_v20 }
 0x111   : > { %617 = vst.msk [vmem:[%s1025_s19 + $0x14] sm:$0xf] %vm611_vm10, %v781_v23  ;;  %625 = vst.msk [vmem:[%s1025_s19 + $0x34] sm:$0xf] %vm611_vm10, %v789_v24 }
 0x112 PF: > { %s13_s14 = sadd.s32 1, %s899_s14   ;;  %s1078_s12 = smov %s895_s13 }
 0x113   : > { %p10_p5 = scmp.ge.s32.totalorder %s13_s14, 4   ;;  %s1079_s13 = smov %s1081_s15 }
 0x115   :  { %12 = sbr.rel (!%p10_p5) target bundleno = 2 (0x2), region = 65 }

// kernel: upsample_network_forward.3
= control target key start
LH: loop header
LB: loop body
LE: loop exit
PB: predicated region body
PF: predicated region fallthrough
CT: control target
= control target key end

     0   :  { %s1073_s27 = smov 0   ;;  %s1075_s28 = smov 0   ;;  %s1208_s0 = inlined_call_operand.vmem [shape: bf16[2,8,80], index: 0, kind: input, shape index: {}]   ;;  %s1209_s1 = inlined_call_operand.vmem [shape: bf16[80,32], index: 1, kind: input, shape index: {}]   ;;  %s1210_s2 = inlined_call_operand.vmem [shape: f32[1,32], index: 2, kind: input, shape index: {}]   ;;  %s1211_s3 = inlined_call_operand.vmem [shape: bf16[2,32,32], index: 3, kind: input, shape index: {}]   ;;  %s1212_s4 = inlined_call_operand.vmem [shape: bf16[2,32,32], index: 4, kind: input, shape index: {}]   ;;  %s1213_s5 = inlined_call_operand.vmem [shape: f32[2,2,32], index: 5, kind: input, shape index: {}]   ;;  %s1214_s6 = inlined_call_operand.vmem [shape: bf16[32,16], index: 6, kind: input, shape index: {}]   ;;  %s1215_s7 = inlined_call_operand.vmem [shape: f32[1,16], index: 7, kind: input, shape index: {}]   ;;  %s1216_s8 = inlined_call_operand.vmem [shape: bf16[2,8,16], index: 8, kind: output, shape index: {}]  }
   0x1   :  { %s1077_s29 = smov 0  }
   0x2 LB: > { %s30_s30 = sadd.s32 1, %s1020_s28  ;;  %p844_p0 = scmp.ge.s32.totalorder %s1024_s29, 1  ;;  %s1024_s29 = sphi %s1077_s29, %s18_s29   ;;  %s1020_s28 = sphi %s1075_s28, %s1218_s28   ;;  %s1016_s27 = sphi %s1073_s27, %s1217_s27  }
   0x3   : > { %p32_p1 = scmp.ge.s32.totalorder %s30_s30, 2  ;;  %p280_p2 = scmp.lt.s32.totalorder %s1024_s29, 3 }
   0x5   : > { %s1220_s30 = smov (%p32_p1, %s30_s30), 0  ;;  %p281_p3 = pnand %p844_p0, %p280_p2 }
   0x6   : > { %v987_v0 = vld [vmem:[%s1209_s1] sm:$0xff] (!%p281_p3)   ;;  %v1026_v1 = vmov (!%p281_p3), 0.0   ;;  %v988_v2 = vld [vmem:[%s1209_s1 + $0x8] sm:$0xff] (!%p281_p3)   ;;  %vm1027_vm0 = vmmov (!%p281_p3), 0   ;;  %p318_p4 = scmp.lt.s32.totalorder (!%p281_p3), %s1016_s27, 1  ;;  %v989_v3 = vld [vmem:[%s1209_s1 + $0x10] sm:$0xff] (!%p281_p3)  }
   0x7   : > { %284 = sbr.rel (%p281_p3) target bundleno = 1334 (0x536), region = 52  ;;  %907 = vmatprep.subr.bf16.mxu0 (!%p281_p3), %v1026_v1  ;;  %921 = vmatprep.subr.bf16.mxu1 (!%p281_p3), %v1026_v1  ;;  %v990_v4 = vld [vmem:[%s1209_s1 + $0x18] sm:$0xff] (!%p281_p3)   ;;  %v991_v5 = vld [vmem:[%s1209_s1 + $0x20] sm:$0xff] (!%p281_p3)   ;;  %vm381_vm1 = vcmask (!%p281_p3), 654336   ;;  %v993_v8 = vld [vmem:[%s1211_s3 + $0x8] sm:$0xff] (!%p281_p3)   ;;  %vm448_vm2 = vcmask (!%p281_p3), 261120  }
   0x8   : > { %908 = vmatpush3.bf16.msra.mxu0 (!%p281_p3), %v987_v0  ;;  %917 = vmatprep.mubr.msk.bf16.mxu0 (!%p281_p3), %vm1027_vm0, %v1026_v1  ;;  %v992_v7 = vld [vmem:[%s1211_s3] sm:$0xff] (!%p281_p3)   ;;  %v995_v18 = vld [vmem:[%s1212_s4 + $0x8] sm:$0xff] (!%p281_p3)   ;;  %v996_v26 = vld [vmem:[%s1211_s3 + $0x10] sm:$0xff] (!%p281_p3)   ;;  %vm764_vm3 = vcmask (!%p281_p3), 125952  }
   0x9   : > { %909 = vmatprep.subr.bf16.mxu0 (!%p281_p3), %v1026_v1  ;;  %925 = vmatprep.mubr.msk.bf16.mxu1 (!%p281_p3), %vm1027_vm0, %v1026_v1  ;;  %v847_v9 = vld [vmem:[%s1210_s2] ss:$0 sm:$0xff] (!%p281_p3)  ;;  %v997_v28 = vld [vmem:[%s1211_s3 + $0x18] sm:$0xff] (!%p281_p3)   ;;  %v998_v29 = vld [vmem:[%s1212_s4 + $0x10] sm:$0xff] (!%p281_p3)  }
   0xa   : > { %922 = vmatpush3.bf16.msra.mxu1 (!%p281_p3), %v992_v7  ;;  %v994_v16 = vld [vmem:[%s1212_s4] sm:$0xff] (!%p281_p3)   ;;  %v999_v38 = vld [vmem:[%s1212_s4 + $0x18] sm:$0xff] (!%p281_p3)   ;;  %v1001_v48 = vld [vmem:[%s1214_s6 + $0x8] sm:$0xff] (!%p281_p3)  }
   0xb   : > { %923 = vmatprep.subr.bf16.mxu1 (!%p281_p3), %v1026_v1  ;;  %v854_v19 = vld [vmem:[%s1213_s5] ss:$0 sm:$0xff] (!%p281_p3)  ;;  %v861_v31 = vld [vmem:[%s1213_s5 + $0x1] ss:$0 sm:$0xff] (!%p281_p3)  ;;  %v867_v40 = vld [vmem:[%s1213_s5 + $0x2] ss:$0 sm:$0xff] (!%p281_p3) }
   0xc   : > { %910 = vmatpush3.bf16.msra.mxu0 (!%p281_p3), %v988_v2  ;;  %v1000_v39 = vld [vmem:[%s1214_s6] sm:$0xff] (!%p281_p3)  }
   0xd   : > { %911 = vmatprep.subr.bf16.mxu0 (!%p281_p3), %v1026_v1  ;;  %v879_v50 = vld [vmem:[%s1213_s5 + $0x3] ss:$0 sm:$0xff] (!%p281_p3)  ;;  %v880_v57 = vld [vmem:[%s1215_s7] ss:$0 sm:$0xff] (!%p281_p3) }
   0xe   : > { %s1222_s27 = smov (!%p318_p4, %s1016_s27), 1  ;;  %924 = vmatpush3.bf16.msra.mxu1 %v993_v8 }
   0xf   : > { %s845_s17 = sshll.u32 %s1222_s27, 2  ;;  %929 = vmatprep.subr.bf16.mxu1 %v1026_v1 }
  0x10   : > { %912 = vmatpush3.bf16.msra.mxu0 %v989_v3  ;;  %s324_s22 = scalar_lea.vmem %s1208_s0, %s845_s17  ;;  %s331_s23 = scalar_lea.vmem %s1216_s8, %s845_s17 }
  0x11   : > { %913 = vmatprep.subr.bf16.mxu0 %v1026_v1  ;;  %v333_v6 = vld [vmem:[%s324_s22] sm:$0xf] }
  0x14   : > { %914 = vmatpush3.bf16.msra.mxu0 %v990_v4 }
  0x15   : > { %915 = vmatprep.subr.bf16.mxu0 %v1026_v1 }
  0x18   : > { %916 = vmatpush3.bf16.msra.mxu0 %v991_v5 }
  0x19   : > { %945 = vmatprep.subr.bf16.mxu0 %v1026_v1 }
  0x1b   : > { %918 = vmatmul.mubr.msk.bf16.vlgmr.msra.gmra.mrb[0].mxu0 %vm381_vm1, %v333_v6 }
  0x1c   : > { %949 = vmatprep.mubr.msk.bf16.mxu0 %vm1027_vm0, %v1026_v1  ;;  %946 = vmatpush3.bf16.msra.mxu0 %v998_v29 }
  0x1d   : > { %947 = vmatprep.subr.bf16.mxu0 %v1026_v1 }
  0x20   : > { %948 = vmatpush3.bf16.msra.mxu0 %v999_v38 }
  0xee   : > { %v419_v10 = vpop.f32.mrb[0].mxu0 }
  0xef   : > { %v420_v11 = vadd.f32 %v847_v9, %v419_v10  ;;  %v919_v12 = vpop.f32.mrb[1].mxu0 }
  0xf0   : > { %v422_v13 = vpop.f32.mrb[2].mxu0 }
  0xf1   : > { %v425_v14 = vmax.f32 %v420_v11, 0.0  ;;  %v920_v15 = vpop.f32.mrb[3].mxu0 }
  0xf3   : > { %v426_v17 = vpack.c.bf16 %v425_v14, %v425_v14 }
  0xf5   : > { %926 = vmatmul.mubr.msk.bf16.vlgmr.msra.gmra.mrb[0].mxu1 %vm448_vm2, %v426_v17 }
  0xf6   : > { %930 = vmatpush3.bf16.msra.mxu1 %v994_v16  ;;  %933 = vmatprep.mubr.msk.bf16.mxu1 %vm1027_vm0, %v1026_v1 }
  0xf7   : > { %931 = vmatprep.subr.bf16.mxu1 %v1026_v1 }
  0xfa   : > { %932 = vmatpush3.bf16.msra.mxu1 %v995_v18 }
  0xfb   : > { %937 = vmatprep.subr.bf16.mxu1 %v1026_v1 }
 0x1c8   : > { %v486_v20 = vpop.f32.mrb[0].mxu1 }
 0x1c9   : > { %v487_v21 = vadd.f32 %v854_v19, %v486_v20  ;;  %v927_v22 = vpop.f32.mrb[1].mxu1 }
 0x1ca   : > { %v489_v23 = vpop.f32.mrb[2].mxu1 }
 0x1cb   : > { %v492_v24 = vmax.f32 %v487_v21, 0.0  ;;  %v928_v25 = vpop.f32.mrb[3].mxu1 }
 0x1cd   : > { %v493_v27 = vpack.c.bf16 %v492_v24, %v492_v24 }
 0x1cf   : > { %934 = vmatmul.mubr.msk.bf16.vlgmr.msra.gmra.mrb[4].mxu1 %vm448_vm2, %v493_v27 }
 0x1d0   : > { %938 = vmatpush3.bf16.msra.mxu1 %v996_v26  ;;  %941 = vmatprep.mubr.msk.bf16.mxu1 %vm1027_vm0, %v1026_v1 }
 0x1d1   : > { %939 = vmatprep.subr.bf16.mxu1 %v1026_v1 }
 0x1d4   : > { %940 = vmatpush3.bf16.msra.mxu1 %v997_v28 }
 0x1d5   : > { %953 = vmatprep.subr.bf16.mxu1 %v1026_v1 }
 0x2a2   : > { %v547_v30 = vpop.f32.mrb[4].mxu1 }
 0x2a3   : > { %v553_v32 = vadd.f32 %v547_v30, %v425_v14  ;;  %v935_v33 = vpop.f32.mrb[5].mxu1 }
 0x2a4   : > { %v550_v34 = vpop.f32.mrb[6].mxu1 }
 0x2a5   : > { %v559_v35 = vadd.f32 %v861_v31, %v553_v32  ;;  %v936_v36 = vpop.f32.mrb[7].mxu1 }
 0x2a7   : > { %v560_v37 = vpack.c.bf16 %v559_v35, %v559_v35 }
 0x2a9   : > { %942 = vmatmul.mubr.msk.bf16.vlgmr.msra.gmra.mrb[8].mxu1 %vm448_vm2, %v560_v37 }
 0x2aa   : > { %957 = vmatprep.mubr.msk.bf16.mxu1 %vm1027_vm0, %v1026_v1  ;;  %954 = vmatpush3.bf16.msra.mxu1 %v1000_v39 }
 0x2ab   : > { %955 = vmatprep.subr.bf16.mxu1 %v1026_v1 }
 0x2ae   : > { %956 = vmatpush3.bf16.msra.mxu1 %v1001_v48 }
 0x37c   : > { %v621_v41 = vpop.f32.mrb[8].mxu1 }
 0x37d   : > { %v622_v42 = vadd.f32 %v867_v40, %v621_v41  ;;  %v943_v43 = vpop.f32.mrb[9].mxu1 }
 0x37e   : > { %v624_v44 = vpop.f32.mrb[10].mxu1 }
 0x37f   : > { %v627_v45 = vmax.f32 %v622_v42, 0.0  ;;  %v944_v46 = vpop.f32.mrb[11].mxu1 }
 0x381   : > { %v628_v47 = vpack.c.bf16 %v627_v45, %v627_v45 }
 0x383   : > { %950 = vmatmul.mubr.msk.bf16.vlgmr.msra.gmra.mrb[4].mxu0 %vm448_vm2, %v628_v47 }
 0x456   : > { %v683_v49 = vpop.f32.mrb[4].mxu0 }
 0x457   : > { %v689_v51 = vadd.f32 %v683_v49, %v559_v35  ;;  %v951_v52 = vpop.f32.mrb[5].mxu0 }
 0x458   : > { %v686_v53 = vpop.f32.mrb[6].mxu0 }
 0x459   : > { %v695_v54 = vadd.f32 %v879_v50, %v689_v51  ;;  %v952_v55 = vpop.f32.mrb[7].mxu0 }
 0x45b   : > { %v696_v56 = vpack.c.bf16 %v695_v54, %v695_v54 }
 0x45d   : > { %958 = vmatmul.mubr.msk.bf16.vlgmr.msra.gmra.mrb[12].mxu1 %vm448_vm2, %v696_v56 }
 0x530   : > { %v757_v58 = vpop.f32.mrb[12].mxu1 }
 0x531   : > { %v758_v59 = vadd.f32 %v880_v57, %v757_v58  ;;  %v959_v60 = vpop.f32.mrb[13].mxu1 }
 0x532   : > { %v760_v61 = vpop.f32.mrb[14].mxu1 }
 0x533   : > { %v763_v62 = vpack.c.bf16 %v758_v59, %v758_v59  ;;  %v960_v63 = vpop.f32.mrb[15].mxu1 }
 0x535   : > { %765 = vst.msk [vmem:[%s331_s23] sm:$0xf] %vm764_vm3, %v763_v62 }
 0x536 PF: > { %s18_s29 = sadd.s32 1, %s1024_s29   ;;  %s1217_s27 = smov %s1020_s28 }
 0x537   : > { %p15_p5 = scmp.ge.s32.totalorder %s18_s29, 4   ;;  %s1218_s28 = smov %s1220_s30 }
 0x539   :  { %17 = sbr.rel (!%p15_p5) target bundleno = 2 (0x2), region = 85 }

// kernel: upsample_network_forward.5
= control target key start
LH: loop header
LB: loop body
LE: loop exit
PB: predicated region body
PF: predicated region fallthrough
CT: control target
= control target key end

     0   :  { %s1408_s12 = smov 0   ;;  %s1410_s13 = smov 0   ;;  %s1725_s0 = inlined_call_operand.vmem [shape: bf16[2,128,16], index: 0, kind: input, shape index: {}]   ;;  %s1726_s1 = inlined_call_operand.vmem [shape: bf16[2,1,2,16], index: 1, kind: input, shape index: {}]   ;;  %s1727_s2 = inlined_call_operand.vmem [shape: bf16[256,130], index: 2, kind: input, shape index: {}]   ;;  %s1728_s3 = inlined_call_operand.vmem [shape: bf16[2,256,16], index: 3, kind: output, shape index: {}]  }
   0x1   :  { %s1412_s14 = smov 0  }
   0x2 LB: > { %s25_s15 = sadd.s32 1, %s1379_s13  ;;  %p1139_p0 = scmp.ge.s32.totalorder %s1383_s14, 1  ;;  %s1383_s14 = sphi %s1412_s14, %s13_s14   ;;  %s1379_s13 = sphi %s1410_s13, %s1736_s13   ;;  %s1375_s12 = sphi %s1408_s12, %s1735_s12  }
   0x3   : > { %p27_p1 = scmp.ge.s32.totalorder %s25_s15, 2  ;;  %p171_p2 = scmp.lt.s32.totalorder %s1383_s14, 3 }
   0x5   : > { %s1738_s15 = smov (%p27_p1, %s25_s15), 0  ;;  %p172_p3 = pnand %p1139_p0, %p171_p2 }
   0x6   : > { %p210_p4 = scmp.lt.s32.totalorder (!%p172_p3), %s1375_s12, 1  ;;  %v1385_v0 = vmov (!%p172_p3), 0   ;;  %vm661_vm0 = vcmask (!%p172_p3), 15360   ;;  %v1315_v1 = vld [vmem:[%s1727_s2 + $0x4] ss:$8 sps:$4 sm:$0xff] (!%p172_p3)   ;;  %vm1386_vm1 = vmmov (!%p172_p3), 1  }
   0x7   : > { %175 = sbr.rel (%p172_p3) target bundleno = 336 (0x150), region = 32  ;;  %714 = vmatprep.subr.bf16.mxu0 (!%p172_p3), %v1385_v0  ;;  %1268 = vmatprep.subr.bf16.mxu1 (!%p172_p3), %v1385_v0  ;;  %vm1434_vm2 = vmpackc.low (!%p172_p3), %vm1386_vm1, %vm1386_vm1  ;;  %v1318_v3 = vld [vmem:[%s1727_s2 + $0x84] ss:$8 sps:$4 sm:$0xff] (!%p172_p3)   ;;  %vm440_vm3 = vsmask.f32 (!%p172_p3), 256  ;;  %vm513_vm4 = vcmask (!%p172_p3), 1040384  }
   0x8   : > { %1184 = vmatprep.mubr.msk.bf16.mxu0 (!%p172_p3), %vm661_vm0, %v1315_v1  ;;  %vm1387_vm5 = vmmov (!%p172_p3), 0   ;;  %1192 = vmatprep.mubr.msk.bf16.mxu1 (!%p172_p3), %vm661_vm0, %v1318_v3  ;;  %vm1489_vm7 = vmand (!%p172_p3), %vm513_vm4, %vm440_vm3  ;;  %v1333_v36 = vld [vmem:[%s1727_s2 + $0xb4] ss:$8 sps:$4 sm:$0xff] (!%p172_p3)   ;;  %vm1003_vm8 = vcmask (!%p172_p3), 125952  }
   0x9   : > { %vm1447_vm6 = vmpackc.low (!%p172_p3), %vm1387_vm5, %vm1387_vm5 }
   0xe   : > { %s1740_s12 = smov (!%p210_p4, %s1375_s12), 1 }
   0xf   : > { %s1234_s18 = sshll.u32 %s1740_s12, 6  ;;  %s224_s26 = scalar_lea.vmem %s1726_s1, %s1740_s12 }
  0x10   : > { %s1445_s23 = scalar_lea.vmem %s1725_s0, %s1234_s18  ;;  %v1479_v26 = vld [vmem:[%s224_s26] sm:$0x1]  ;;  %s1235_s18 = sshll.u32 %s1740_s12, 7 }
  0x11   : > { %v270_v5 = vld [vmem:[%s1445_s23] sm:$0xf]  ;;  %v271_v6 = vld [vmem:[%s1445_s23 + $0x4] sm:$0xf]  ;;  %v272_v7 = vld [vmem:[%s1445_s23 + $0x8] sm:$0xf]  ;;  %s1650_s21 = scalar_lea.vmem %s1728_s3, %s1235_s18 }
  0x12   : > { %v384_v8 = vsel %vm1434_vm2, %v270_v5, 0  ;;  %v385_v9 = vsel %vm1434_vm2, %v271_v6, 0  ;;  %v273_v10 = vld [vmem:[%s1445_s23 + $0xc] sm:$0xf]  ;;  %v386_v11 = vsel %vm1434_vm2, %v272_v7, 0 }
  0x13   : > { %v1144_v12 = vcombine.low %v384_v8, %v385_v9  ;;  %v387_v13 = vsel %vm1447_vm6, %v273_v10, 0  ;;  %v274_v14 = vld [vmem:[%s1445_s23 + $0x10] sm:$0xf]  ;;  %v275_v15 = vld [vmem:[%s1445_s23 + $0x14] sm:$0xf] }
  0x14   : > { %v1145_v16 = vcombine.low %v386_v11, %v387_v13  ;;  %v388_v17 = vsel %vm1447_vm6, %v274_v14, 0  ;;  %v389_v18 = vsel %vm1447_vm6, %v275_v15, 0  ;;  %v276_v19 = vld [vmem:[%s1445_s23 + $0x18] sm:$0xf]  ;;  %v277_v20 = vld [vmem:[%s1445_s23 + $0x1c] sm:$0xf] }
  0x15   : > { %v442_v21 = vshrl.u32 %v1144_v12, 16  ;;  %v445_v22 = vshll.u32 %v1144_v12, 16  ;;  %v1146_v23 = vcombine.low %v388_v17, %v389_v18  ;;  %v390_v24 = vsel %vm1447_vm6, %v276_v19, 0  ;;  %v278_v25 = vld [vmem:[%s1445_s23 + $0x20] sm:$0xf] }
  0x16   : > { %v449_v27 = vshrl.u32 %v1145_v16, 16  ;;  %v452_v28 = vshll.u32 %v1145_v16, 16  ;;  %v391_v29 = vsel %vm1447_vm6, %v277_v20, 0  ;;  %v279_v30 = vld [vmem:[%s1445_s23 + $0x24] sm:$0xf]  ;;  %v392_v34 = vsel %vm1447_vm6, %v278_v25, 0 }
  0x17   : > { %v444_v31 = vrot.slane %v442_v21, 7  ;;  %v457_v32 = vshrl.u32 %v1146_v23, 16  ;;  %v1147_v33 = vcombine.low %v390_v24, %v391_v29  ;;  %v280_v35 = vld [vmem:[%s1445_s23 + $0x28] sm:$0xf]  ;;  %v393_v38 = vsel %vm1447_vm6, %v279_v30, 0 }
  0x18   : > { %v451_v37 = vrot.slane %v449_v27, 7  ;;  %v281_v39 = vld [vmem:[%s1445_s23 + $0x2c] sm:$0xf]  ;;  %v460_v42 = vshll.u32 %v1146_v23, 16  ;;  %v1148_v45 = vcombine.low %v392_v34, %v393_v38  ;;  %v394_v46 = vsel %vm1447_vm6, %v280_v35, 0 }
  0x19   : > { %v447_v40 = vor.u32 %v445_v22, %v444_v31  ;;  %v459_v41 = vrot.slane %v457_v32, 7  ;;  %v465_v43 = vshrl.u32 %v1147_v33, 16  ;;  %v395_v47 = vsel %vm1447_vm6, %v281_v39, 0  ;;  %v282_v49 = vld [vmem:[%s1445_s23 + $0x30] sm:$0xf] }
  0x1a   : > { %v454_v44 = vor.u32 %v452_v28, %v451_v37  ;;  %v283_v50 = vld [vmem:[%s1445_s23 + $0x34] sm:$0xf]  ;;  %v468_v52 = vshll.u32 %v1147_v33, 16  ;;  %v473_v55 = vshrl.u32 %v1148_v45, 16  ;;  %v1149_v56 = vcombine.low %v394_v46, %v395_v47  ;;  %v284_v59 = vld [vmem:[%s1445_s23 + $0x38] sm:$0xf] }
  0x1b   : > { %v515_v48 = vsel %vm1489_vm7, %v1479_v26, %v447_v40  ;;  %v467_v51 = vrot.slane %v465_v43, 7  ;;  %v462_v54 = vor.u32 %v460_v42, %v459_v41  ;;  %v396_v57 = vsel %vm1447_vm6, %v282_v49, 0  ;;  %v285_v60 = vld [vmem:[%s1445_s23 + $0x3c] sm:$0xf]  ;;  %v1313_v27 = vld [vmem:[%s1727_s2] ss:$8 sps:$4 sm:$0xff]  }
  0x1c   : > { %715 = vmatpush1.bf16.msra.mxu0 %v515_v48  ;;  %1277 = vmatpush1.bf16.msra.mxu1 %v515_v48  ;;  %v455_v53 = vsel %vm440_vm3, %v444_v31, %v454_v44  ;;  %v397_v58 = vsel %vm1447_vm6, %v283_v50, 0  ;;  %v476_v62 = vshll.u32 %v1148_v45, 16  ;;  %v475_v1 = vrot.slane %v473_v55, 7  ;;  %v1316_v28 = vld [vmem:[%s1727_s2 + $0x80] ss:$8 sps:$4 sm:$0xff]  }
  0x1d   : > { %716 = vmatprep.subr.bf16.mxu0 %v1385_v0  ;;  %1269 = vmatprep.subr.bf16.mxu1 %v1385_v0  ;;  %v470_v61 = vor.u32 %v468_v52, %v467_v51  ;;  %v463_v63 = vsel %vm440_vm3, %v451_v37, %v462_v54  ;;  %v481_v2 = vshrl.u32 %v1149_v56, 16  ;;  %v1150_v3 = vcombine.low %v396_v57, %v397_v58  ;;  %v1323_v29 = vld [vmem:[%s1727_s2 + $0x10] ss:$8 sps:$4 sm:$0xff]   ;;  %v1325_v31 = vld [vmem:[%s1727_s2 + $0x24] ss:$8 sps:$4 sm:$0xff]  }
  0x1e   : > { %v398_v5 = vsel %vm1447_vm6, %v284_v59, 0  ;;  %v399_v6 = vsel %vm1447_vm6, %v285_v60, 0  ;;  %v484_v8 = vshll.u32 %v1149_v56, 16  ;;  %v478_v9 = vor.u32 %v476_v62, %v475_v1  ;;  %v1324_v30 = vld [vmem:[%s1727_s2 + $0x90] ss:$8 sps:$4 sm:$0xff]  }
  0x1f   : > { %v471_v7 = vsel %vm440_vm3, %v459_v41, %v470_v61  ;;  %v483_v10 = vrot.slane %v481_v2, 7  ;;  %v489_v11 = vshrl.u32 %v1150_v3, 16  ;;  %v1151_v12 = vcombine.low %v398_v5, %v399_v6  ;;  %v1327_v32 = vld [vmem:[%s1727_s2 + $0xa4] ss:$8 sps:$4 sm:$0xff]   ;;  %v1329_v33 = vld [vmem:[%s1727_s2 + $0x20] ss:$8 sps:$4 sm:$0xff]  }
  0x20   : > { %717 = vmatpush1.bf16.msra.mxu0 %v455_v53  ;;  %1278 = vmatpush1.bf16.msra.mxu1 %v455_v53  ;;  %v492_v13 = vshll.u32 %v1150_v3, 16  ;;  %v479_v4 = vsel %vm440_vm3, %v467_v51, %v478_v9  ;;  %v1330_v34 = vld [vmem:[%s1727_s2 + $0xa0] ss:$8 sps:$4 sm:$0xff]   ;;  %v1331_v35 = vld [vmem:[%s1727_s2 + $0x34] ss:$8 sps:$4 sm:$0xff]  }
  0x21   : > { %718 = vmatprep.subr.bf16.mxu0 %v1385_v0  ;;  %1270 = vmatprep.subr.bf16.mxu1 %v1385_v0  ;;  %v486_v14 = vor.u32 %v484_v8, %v483_v10  ;;  %v491_v15 = vrot.slane %v489_v11, 7  ;;  %v497_v16 = vshrl.u32 %v1151_v12, 16  ;;  %v500_v20 = vshll.u32 %v1151_v12, 16  ;;  %v1335_v37 = vld [vmem:[%s1727_s2 + $0x30] ss:$8 sps:$4 sm:$0xff]  }
  0x22   : > { %v1336_v38 = vld [vmem:[%s1727_s2 + $0xb0] ss:$8 sps:$4 sm:$0xff]   ;;  %v1337_v39 = vld [vmem:[%s1727_s2 + $0x44] ss:$8 sps:$4 sm:$0xff]   ;;  %v1341_v41 = vld [vmem:[%s1727_s2 + $0x40] ss:$8 sps:$4 sm:$0xff]  }
  0x23   : > { %v487_v17 = vsel %vm440_vm3, %v475_v1, %v486_v14  ;;  %v494_v18 = vor.u32 %v492_v13, %v491_v15  ;;  %v499_v19 = vrot.slane %v497_v16, 7  ;;  %v1339_v40 = vld [vmem:[%s1727_s2 + $0xc4] ss:$8 sps:$4 sm:$0xff]   ;;  %v1342_v42 = vld [vmem:[%s1727_s2 + $0xc0] ss:$8 sps:$4 sm:$0xff]  }
  0x24   : > { %719 = vmatpush1.bf16.msra.mxu0 %v463_v63  ;;  %1279 = vmatpush1.bf16.msra.mxu1 %v463_v63  ;;  %v1343_v43 = vld [vmem:[%s1727_s2 + $0x54] ss:$8 sps:$4 sm:$0xff]   ;;  %v1347_v45 = vld [vmem:[%s1727_s2 + $0x50] ss:$8 sps:$4 sm:$0xff]   ;;  %v1349_v47 = vld [vmem:[%s1727_s2 + $0x64] ss:$8 sps:$4 sm:$0xff]  }
  0x25   : > { %720 = vmatprep.subr.bf16.mxu0 %v1385_v0  ;;  %1271 = vmatprep.subr.bf16.mxu1 %v1385_v0  ;;  %v495_v21 = vsel %vm440_vm3, %v483_v10, %v494_v18  ;;  %v502_v22 = vor.u32 %v500_v20, %v499_v19  ;;  %v516_v24 = vsel %vm1489_vm7, %v499_v19, %v1479_v26  ;;  %v1319_v26 = vld [vmem:[%s1727_s2 + $0x14] ss:$8 sps:$4 sm:$0xff]   ;;  %v1348_v46 = vld [vmem:[%s1727_s2 + $0xd0] ss:$8 sps:$4 sm:$0xff]   ;;  %v1351_v48 = vld [vmem:[%s1727_s2 + $0xe4] ss:$8 sps:$4 sm:$0xff]  }
  0x26   : > { %v712_v25 = vsel %vm513_vm4, %v516_v24, 0  ;;  %v1345_v44 = vld [vmem:[%s1727_s2 + $0xd4] ss:$8 sps:$4 sm:$0xff]   ;;  %v1353_v49 = vld [vmem:[%s1727_s2 + $0x60] ss:$8 sps:$4 sm:$0xff]  }
  0x27   : > { %v503_v23 = vsel %vm440_vm3, %v491_v15, %v502_v22  ;;  %v1354_v50 = vld [vmem:[%s1727_s2 + $0xe0] ss:$8 sps:$4 sm:$0xff]   ;;  %v1355_v51 = vld [vmem:[%s1727_s2 + $0x74] ss:$8 sps:$4 sm:$0xff]   ;;  %v1359_v53 = vld [vmem:[%s1727_s2 + $0x70] ss:$8 sps:$4 sm:$0xff]  }
  0x28   : > { %721 = vmatpush1.bf16.msra.mxu0 %v471_v7  ;;  %1280 = vmatpush1.bf16.msra.mxu1 %v471_v7  ;;  %v1357_v52 = vld [vmem:[%s1727_s2 + $0xf4] ss:$8 sps:$4 sm:$0xff]   ;;  %v1360_v54 = vld [vmem:[%s1727_s2 + $0xf0] ss:$8 sps:$4 sm:$0xff]  }
  0x29   : > { %722 = vmatprep.subr.bf16.mxu0 %v1385_v0  ;;  %1272 = vmatprep.subr.bf16.mxu1 %v1385_v0 }
  0x2c   : > { %723 = vmatpush1.bf16.msra.mxu0 %v479_v4  ;;  %1281 = vmatpush1.bf16.msra.mxu1 %v479_v4 }
  0x2d   : > { %724 = vmatprep.subr.bf16.mxu0 %v1385_v0  ;;  %1273 = vmatprep.subr.bf16.mxu1 %v1385_v0 }
  0x30   : > { %725 = vmatpush1.bf16.msra.mxu0 %v487_v17  ;;  %1282 = vmatpush1.bf16.msra.mxu1 %v487_v17 }
  0x31   : > { %726 = vmatprep.subr.bf16.mxu0 %v1385_v0  ;;  %1274 = vmatprep.subr.bf16.mxu1 %v1385_v0 }
  0x34   : > { %727 = vmatpush1.bf16.msra.mxu0 %v495_v21  ;;  %1283 = vmatpush1.bf16.msra.mxu1 %v495_v21 }
  0x35   : > { %728 = vmatprep.subr.bf16.mxu0 %v1385_v0  ;;  %1275 = vmatprep.subr.bf16.mxu1 %v1385_v0 }
  0x38   : > { %729 = vmatpush1.bf16.msra.mxu0 %v503_v23  ;;  %1284 = vmatpush1.bf16.msra.mxu1 %v503_v23 }
  0x39   : > { %730 = vmatprep.subr.bf16.mxu0 %v1385_v0  ;;  %1276 = vmatprep.subr.bf16.mxu1 %v1385_v0  ;;  %v1321_v0 = vld [vmem:[%s1727_s2 + $0x94] ss:$8 sps:$4 sm:$0xff]  }
  0x3c   : > { %731 = vmatpush1.bf16.msra.mxu0 %v712_v25  ;;  %1285 = vmatpush1.bf16.msra.mxu1 %v712_v25 }
  0x3f   : > { %747 = vmatmul.mubr.bf16.vlgmr.msra.gmra.mrb[0].mxu0 %v1313_v27  ;;  %811 = vmatmul.mubr.bf16.vlgmr.msra.gmra.mrb[0].mxu1 %v1316_v28 }
  0x40   : > { %1185 = vmatprep.mubr.msk.bf16.mxu0 %vm661_vm0, %v1319_v26  ;;  %1193 = vmatprep.mubr.msk.bf16.mxu1 %vm661_vm0, %v1321_v0 }
  0x47   : > { %755 = vmatmul.mubr.bf16.gmra.mrb[4].mxu0 %v1323_v29  ;;  %819 = vmatmul.mubr.bf16.gmra.mrb[4].mxu1 %v1324_v30 }
  0x48   : > { %1186 = vmatprep.mubr.msk.bf16.mxu0 %vm661_vm0, %v1325_v31  ;;  %1194 = vmatprep.mubr.msk.bf16.mxu1 %vm661_vm0, %v1327_v32 }
  0x4f   : > { %763 = vmatmul.mubr.bf16.gmra.mrb[8].mxu0 %v1329_v33  ;;  %827 = vmatmul.mubr.bf16.gmra.mrb[8].mxu1 %v1330_v34 }
  0x50   : > { %1187 = vmatprep.mubr.msk.bf16.mxu0 %vm661_vm0, %v1331_v35  ;;  %1195 = vmatprep.mubr.msk.bf16.mxu1 %vm661_vm0, %v1333_v36 }
  0x57   : > { %771 = vmatmul.mubr.bf16.gmra.mrb[12].mxu0 %v1335_v37  ;;  %835 = vmatmul.mubr.bf16.gmra.mrb[12].mxu1 %v1336_v38 }
  0x58   : > { %1188 = vmatprep.mubr.msk.bf16.mxu0 %vm661_vm0, %v1337_v39  ;;  %1196 = vmatprep.mubr.msk.bf16.mxu1 %vm661_vm0, %v1339_v40 }
  0x5f   : > { %779 = vmatmul.mubr.bf16.gmra.mrb[16].mxu0 %v1341_v41  ;;  %843 = vmatmul.mubr.bf16.gmra.mrb[16].mxu1 %v1342_v42 }
  0x60   : > { %1189 = vmatprep.mubr.msk.bf16.mxu0 %vm661_vm0, %v1343_v43  ;;  %1197 = vmatprep.mubr.msk.bf16.mxu1 %vm661_vm0, %v1345_v44 }
  0x67   : > { %787 = vmatmul.mubr.bf16.gmra.mrb[20].mxu0 %v1347_v45  ;;  %851 = vmatmul.mubr.bf16.gmra.mrb[20].mxu1 %v1348_v46 }
  0x68   : > { %1190 = vmatprep.mubr.msk.bf16.mxu0 %vm661_vm0, %v1349_v47  ;;  %1198 = vmatprep.mubr.msk.bf16.mxu1 %vm661_vm0, %v1351_v48 }
  0x6f   : > { %795 = vmatmul.mubr.bf16.gmra.mrb[24].mxu0 %v1353_v49  ;;  %859 = vmatmul.mubr.bf16.gmra.mrb[24].mxu1 %v1354_v50 }
  0x70   : > { %1191 = vmatprep.mubr.msk.bf16.mxu0 %vm661_vm0, %v1355_v51  ;;  %1199 = vmatprep.mubr.msk.bf16.mxu1 %vm661_vm0, %v1357_v52 }
  0x77   : > { %803 = vmatmul.mubr.bf16.gmra.mrb[28].mxu0 %v1359_v53  ;;  %867 = vmatmul.mubr.bf16.gmra.mrb[28].mxu1 %v1360_v54 }
 0x112   : > { %v748_v55 = vpop.f32.mrb[0].mxu0  ;;  %v812_v56 = vpop.f32.mrb[0].mxu1 }
 0x113   : > { %v1236_v57 = vpack.c.bf16 %v748_v55, %v748_v55  ;;  %v1252_v58 = vpack.c.bf16 %v812_v56, %v812_v56  ;;  %v750_v59 = vpop.f32.mrb[1].mxu0  ;;  %v814_v60 = vpop.f32.mrb[1].mxu1 }
 0x114   : > { %v751_v61 = vpop.f32.mrb[2].mxu0  ;;  %v815_v62 = vpop.f32.mrb[2].mxu1 }
 0x115   : > { %1004 = vst.msk [vmem:[%s1650_s21] sm:$0xf] %vm1003_vm8, %v1236_v57  ;;  %1020 = vst.msk [vmem:[%s1650_s21 + $0x40] sm:$0xf] %vm1003_vm8, %v1252_v58  ;;  %v1237_v63 = vpack.c.bf16 %v751_v61, %v751_v61  ;;  %v1253_v1 = vpack.c.bf16 %v815_v62, %v815_v62  ;;  %v753_v2 = vpop.f32.mrb[3].mxu0  ;;  %v817_v3 = vpop.f32.mrb[3].mxu1 }
 0x117   : > { %1005 = vst.msk [vmem:[%s1650_s21 + $0x4] sm:$0xf] %vm1003_vm8, %v1237_v63  ;;  %1021 = vst.msk [vmem:[%s1650_s21 + $0x44] sm:$0xf] %vm1003_vm8, %v1253_v1 }
 0x11a   : > { %v756_v5 = vpop.f32.mrb[4].mxu0  ;;  %v820_v6 = vpop.f32.mrb[4].mxu1 }
 0x11b   : > { %v1238_v7 = vpack.c.bf16 %v756_v5, %v756_v5  ;;  %v1254_v8 = vpack.c.bf16 %v820_v6, %v820_v6  ;;  %v758_v9 = vpop.f32.mrb[5].mxu0  ;;  %v822_v10 = vpop.f32.mrb[5].mxu1 }
 0x11c   : > { %v759_v11 = vpop.f32.mrb[6].mxu0  ;;  %v823_v12 = vpop.f32.mrb[6].mxu1 }
 0x11d   : > { %1006 = vst.msk [vmem:[%s1650_s21 + $0x8] sm:$0xf] %vm1003_vm8, %v1238_v7  ;;  %1022 = vst.msk [vmem:[%s1650_s21 + $0x48] sm:$0xf] %vm1003_vm8, %v1254_v8  ;;  %v1239_v13 = vpack.c.bf16 %v759_v11, %v759_v11  ;;  %v1255_v4 = vpack.c.bf16 %v823_v12, %v823_v12  ;;  %v761_v14 = vpop.f32.mrb[7].mxu0  ;;  %v825_v15 = vpop.f32.mrb[7].mxu1 }
 0x11f   : > { %1007 = vst.msk [vmem:[%s1650_s21 + $0xc] sm:$0xf] %vm1003_vm8, %v1239_v13  ;;  %1023 = vst.msk [vmem:[%s1650_s21 + $0x4c] sm:$0xf] %vm1003_vm8, %v1255_v4 }
 0x122   : > { %v764_v16 = vpop.f32.mrb[8].mxu0  ;;  %v828_v17 = vpop.f32.mrb[8].mxu1 }
 0x123   : > { %v1240_v18 = vpack.c.bf16 %v764_v16, %v764_v16  ;;  %v1256_v19 = vpack.c.bf16 %v828_v17, %v828_v17  ;;  %v766_v20 = vpop.f32.mrb[9].mxu0  ;;  %v830_v21 = vpop.f32.mrb[9].mxu1 }
 0x124   : > { %v767_v22 = vpop.f32.mrb[10].mxu0  ;;  %v831_v23 = vpop.f32.mrb[10].mxu1 }
 0x125   : > { %1008 = vst.msk [vmem:[%s1650_s21 + $0x10] sm:$0xf] %vm1003_vm8, %v1240_v18  ;;  %1024 = vst.msk [vmem:[%s1650_s21 + $0x50] sm:$0xf] %vm1003_vm8, %v1256_v19  ;;  %v1241_v24 = vpack.c.bf16 %v767_v22, %v767_v22  ;;  %v1257_v25 = vpack.c.bf16 %v831_v23, %v831_v23  ;;  %v769_v27 = vpop.f32.mrb[11].mxu0  ;;  %v833_v28 = vpop.f32.mrb[11].mxu1 }
 0x127   : > { %1009 = vst.msk [vmem:[%s1650_s21 + $0x14] sm:$0xf] %vm1003_vm8, %v1241_v24  ;;  %1025 = vst.msk [vmem:[%s1650_s21 + $0x54] sm:$0xf] %vm1003_vm8, %v1257_v25 }
 0x12a   : > { %v772_v26 = vpop.f32.mrb[12].mxu0  ;;  %v836_v0 = vpop.f32.mrb[12].mxu1 }
 0x12b   : > { %v1242_v29 = vpack.c.bf16 %v772_v26, %v772_v26  ;;  %v1258_v30 = vpack.c.bf16 %v836_v0, %v836_v0  ;;  %v774_v31 = vpop.f32.mrb[13].mxu0  ;;  %v838_v32 = vpop.f32.mrb[13].mxu1 }
 0x12c   : > { %v775_v33 = vpop.f32.mrb[14].mxu0  ;;  %v839_v34 = vpop.f32.mrb[14].mxu1 }
 0x12d   : > { %1010 = vst.msk [vmem:[%s1650_s21 + $0x18] sm:$0xf] %vm1003_vm8, %v1242_v29  ;;  %1026 = vst.msk [vmem:[%s1650_s21 + $0x58] sm:$0xf] %vm1003_vm8, %v1258_v30  ;;  %v1243_v35 = vpack.c.bf16 %v775_v33, %v775_v33  ;;  %v1259_v36 = vpack.c.bf16 %v839_v34, %v839_v34  ;;  %v777_v37 = vpop.f32.mrb[15].mxu0  ;;  %v841_v38 = vpop.f32.mrb[15].mxu1 }
 0x12f   : > { %1011 = vst.msk [vmem:[%s1650_s21 + $0x1c] sm:$0xf] %vm1003_vm8, %v1243_v35  ;;  %1027 = vst.msk [vmem:[%s1650_s21 + $0x5c] sm:$0xf] %vm1003_vm8, %v1259_v36 }
 0x132   : > { %v780_v39 = vpop.f32.mrb[16].mxu0  ;;  %v844_v40 = vpop.f32.mrb[16].mxu1 }
 0x133   : > { %v1244_v41 = vpack.c.bf16 %v780_v39, %v780_v39  ;;  %v1260_v42 = vpack.c.bf16 %v844_v40, %v844_v40  ;;  %v782_v43 = vpop.f32.mrb[17].mxu0  ;;  %v846_v44 = vpop.f32.mrb[17].mxu1 }
 0x134   : > { %v783_v45 = vpop.f32.mrb[18].mxu0  ;;  %v847_v46 = vpop.f32.mrb[18].mxu1 }
 0x135   : > { %1012 = vst.msk [vmem:[%s1650_s21 + $0x20] sm:$0xf] %vm1003_vm8, %v1244_v41  ;;  %1028 = vst.msk [vmem:[%s1650_s21 + $0x60] sm:$0xf] %vm1003_vm8, %v1260_v42  ;;  %v1245_v47 = vpack.c.bf16 %v783_v45, %v783_v45  ;;  %v1261_v48 = vpack.c.bf16 %v847_v46, %v847_v46  ;;  %v785_v49 = vpop.f32.mrb[19].mxu0  ;;  %v849_v50 = vpop.f32.mrb[19].mxu1 }
 0x137   : > { %1013 = vst.msk [vmem:[%s1650_s21 + $0x24] sm:$0xf] %vm1003_vm8, %v1245_v47  ;;  %1029 = vst.msk [vmem:[%s1650_s21 + $0x64] sm:$0xf] %vm1003_vm8, %v1261_v48 }
 0x13a   : > { %v788_v51 = vpop.f32.mrb[20].mxu0  ;;  %v852_v52 = vpop.f32.mrb[20].mxu1 }
 0x13b   : > { %v1246_v53 = vpack.c.bf16 %v788_v51, %v788_v51  ;;  %v1262_v54 = vpack.c.bf16 %v852_v52, %v852_v52  ;;  %v790_v55 = vpop.f32.mrb[21].mxu0  ;;  %v854_v56 = vpop.f32.mrb[21].mxu1 }
 0x13c   : > { %v791_v57 = vpop.f32.mrb[22].mxu0  ;;  %v855_v58 = vpop.f32.mrb[22].mxu1 }
 0x13d   : > { %1014 = vst.msk [vmem:[%s1650_s21 + $0x28] sm:$0xf] %vm1003_vm8, %v1246_v53  ;;  %1030 = vst.msk [vmem:[%s1650_s21 + $0x68] sm:$0xf] %vm1003_vm8, %v1262_v54  ;;  %v1247_v59 = vpack.c.bf16 %v791_v57, %v791_v57  ;;  %v1263_v60 = vpack.c.bf16 %v855_v58, %v855_v58  ;;  %v793_v61 = vpop.f32.mrb[23].mxu0  ;;  %v857_v62 = vpop.f32.mrb[23].mxu1 }
 0x13f   : > { %1015 = vst.msk [vmem:[%s1650_s21 + $0x2c] sm:$0xf] %vm1003_vm8, %v1247_v59  ;;  %1031 = vst.msk [vmem:[%s1650_s21 + $0x6c] sm:$0xf] %vm1003_vm8, %v1263_v60 }
 0x142   : > { %v796_v63 = vpop.f32.mrb[24].mxu0  ;;  %v860_v1 = vpop.f32.mrb[24].mxu1 }
 0x143   : > { %v1248_v2 = vpack.c.bf16 %v796_v63, %v796_v63  ;;  %v1264_v3 = vpack.c.bf16 %v860_v1, %v860_v1  ;;  %v798_v5 = vpop.f32.mrb[25].mxu0  ;;  %v862_v6 = vpop.f32.mrb[25].mxu1 }
 0x144   : > { %v799_v7 = vpop.f32.mrb[26].mxu0  ;;  %v863_v8 = vpop.f32.mrb[26].mxu1 }
 0x145   : > { %1016 = vst.msk [vmem:[%s1650_s21 + $0x30] sm:$0xf] %vm1003_vm8, %v1248_v2  ;;  %1032 = vst.msk [vmem:[%s1650_s21 + $0x70] sm:$0xf] %vm1003_vm8, %v1264_v3  ;;  %v1249_v9 = vpack.c.bf16 %v799_v7, %v799_v7  ;;  %v1265_v10 = vpack.c.bf16 %v863_v8, %v863_v8  ;;  %v801_v11 = vpop.f32.mrb[27].mxu0  ;;  %v865_v12 = vpop.f32.mrb[27].mxu1 }
 0x147   : > { %1017 = vst.msk [vmem:[%s1650_s21 + $0x34] sm:$0xf] %vm1003_vm8, %v1249_v9  ;;  %1033 = vst.msk [vmem:[%s1650_s21 + $0x74] sm:$0xf] %vm1003_vm8, %v1265_v10 }
 0x14a   : > { %v804_v13 = vpop.f32.mrb[28].mxu0  ;;  %v868_v4 = vpop.f32.mrb[28].mxu1 }
 0x14b   : > { %v1250_v14 = vpack.c.bf16 %v804_v13, %v804_v13  ;;  %v1266_v15 = vpack.c.bf16 %v868_v4, %v868_v4  ;;  %v806_v16 = vpop.f32.mrb[29].mxu0  ;;  %v870_v17 = vpop.f32.mrb[29].mxu1 }
 0x14c   : > { %v807_v18 = vpop.f32.mrb[30].mxu0  ;;  %v871_v19 = vpop.f32.mrb[30].mxu1 }
 0x14d   : > { %1018 = vst.msk [vmem:[%s1650_s21 + $0x38] sm:$0xf] %vm1003_vm8, %v1250_v14  ;;  %1034 = vst.msk [vmem:[%s1650_s21 + $0x78] sm:$0xf] %vm1003_vm8, %v1266_v15  ;;  %v1251_v20 = vpack.c.bf16 %v807_v18, %v807_v18  ;;  %v1267_v21 = vpack.c.bf16 %v871_v19, %v871_v19  ;;  %v809_v22 = vpop.f32.mrb[31].mxu0  ;;  %v873_v23 = vpop.f32.mrb[31].mxu1 }
 0x14f   : > { %1019 = vst.msk [vmem:[%s1650_s21 + $0x3c] sm:$0xf] %vm1003_vm8, %v1251_v20  ;;  %1035 = vst.msk [vmem:[%s1650_s21 + $0x7c] sm:$0xf] %vm1003_vm8, %v1267_v21 }
 0x150 PF: > { %s13_s14 = sadd.s32 1, %s1383_s14   ;;  %s1735_s12 = smov %s1379_s13 }
 0x151   : > { %p10_p5 = scmp.ge.s32.totalorder %s13_s14, 4   ;;  %s1736_s13 = smov %s1738_s15 }
 0x153   :  { %12 = sbr.rel (!%p10_p5) target bundleno = 2 (0x2), region = 65 }

</bundles_post_ra>
